<compile_context>
chip_gen: v7x
topology: tpu7x:2x2x1
jax: 0.10.0
libtpu: 0.0.40
codegen_flags: <defaults>
</compile_context>

<pallas_src>
import jax
import jax.numpy as jnp
from jax import lax
from jax.experimental import pallas as pl
from jax.experimental.pallas import tpu as pltpu

K_GROUP = 4        # ToMe group size (k=4 in the PyTorch module)
TOPK = 8           # number of 2-D nearest dst candidates (x=8 in the module)
NA_CHUNK = 1024    # lane chunk for the dense (Nb, Na) similarity/assignment work
_NEG = -3.0e38     # additive mask for non-candidate (dst, src) pairs


# ---------------------------------------------------------------------------
# Shape-only precomputation (identical across the batch, done in plain JAX)
# ---------------------------------------------------------------------------
def compute_candidate_nn(n_tokens):
    """Reproduces the split-index / 2-D coordinate / cdist / topk logic of the
    PyTorch reference.  Returns nn_idx of shape (Na, TOPK), int32."""
    k = K_GROUP
    idx = jnp.arange(n_tokens, dtype=jnp.int32)
    a_idx = idx.reshape(-1, k)[:, : k - 1].reshape(-1)          # (Na,)
    b_idx = idx[k - 1 :: k]                                     # (Nb,)

    def coords(ind):
        side = int(ind.shape[0] ** 0.5)                         # faithful to the module
        return jnp.stack([ind // side, ind % side], axis=-1).astype(jnp.float32)

    ac, bc = coords(a_idx), coords(b_idx)
    d = jnp.sqrt(jnp.sum((ac[:, None, :] - bc[None, :, :]) ** 2, axis=-1))
    _, nn_idx = jax.lax.top_k(-d, TOPK)                         # smallest distances
    return nn_idx                                               # (Na, TOPK)


# ---------------------------------------------------------------------------
# Generation-aware sizing helpers
# ---------------------------------------------------------------------------
def _vmem_capacity_bytes():
    try:
        cap = int(getattr(pltpu.get_tpu_info(), "vmem_capacity_bytes", 0))
        if cap > 0:
            return cap
    except Exception:
        pass
    return 64 * 1024 * 1024       # conservative default (v7x-sized)


def _pick_batch_block(batch, per_image_io_bytes, fixed_bytes, budget_bytes):
    """Largest batch block in {8,4,2,1} that (a) divides B, (b) fits a VMEM
    budget with double-buffered per-image blocks, and (c) keeps >=2 grid steps
    (megacore / 2-TC friendly); otherwise the largest that just fits."""
    def fits(bb):
        return fixed_bytes + 2 * bb * per_image_io_bytes <= budget_bytes
    for cand in (8, 4, 2, 1):
        if batch % cand == 0 and (batch // cand) >= 2 and fits(cand):
            return cand
    for cand in (8, 4, 2, 1):
        if batch % cand == 0 and fits(cand):
            return cand
    return 1


# ---------------------------------------------------------------------------
# Pallas kernel: Bblk batch elements per grid step, channel-major tiles
# ---------------------------------------------------------------------------
def xcy_kernel(a_ref, b_ref, nn_ref, w_ref, scale_ref, bias_ref, out_ref):
    # a_ref   : (Bblk, C, Na)   src tokens (3 of every 4), channel-major
    # b_ref   : (Bblk, C, Nb)   dst tokens (every 4th),    channel-major
    # nn_ref  : (TOPK, Na) i32  2-D-nearest dst candidates per src token
    # w_ref   : (out_ch, C)     1x1 conv weight
    # scale_ref / bias_ref : (out_ch, 1)  folded BatchNorm affine
    # out_ref : (Bblk, out_ch, Nb)
    bblk, c, na = a_ref.shape
    nb = b_ref.shape[2]
    topk = nn_ref.shape[0]
    out_ch = w_ref.shape[0]
    neg = jnp.float32(_NEG)

    # --- batch-invariant hoists (once per grid step) ------------------------
    nn = nn_ref[...]                                              # (TOPK, Na)
    w = w_ref[...]                                                # (out_ch, C)
    scale_b = jnp.broadcast_to(scale_ref[...], (out_ch, nb))
    bias_b = jnp.broadcast_to(bias_ref[...], (out_ch, nb))

    def build_mask(lo, size):
        """Additive candidate bias (0 if dst row is a 2-D-NN candidate of the
        src column, -3e38 otherwise) + dst-row iota, for src cols [lo, lo+size)."""
        nn_c = lax.slice_in_dim(nn, lo, lo + size, axis=1)        # (TOPK, size)
        rows = lax.broadcasted_iota(jnp.int32, (nb, size), 0)
        hit = rows == lax.slice_in_dim(nn_c, 0, 1, axis=0)
        for t in range(1, topk):
            hit = jnp.logical_or(hit, rows == lax.slice_in_dim(nn_c, t, t + 1, axis=0))
        return jnp.where(hit, jnp.float32(0.0), neg), rows

    def merge_partial(a_blk, sim_bias, rows, b_n):
        """Scatter-mean numerators / counts contributed by src columns a_blk."""
        size = a_blk.shape[1]
        # metric normalization over channels (faithful: no eps, like torch)
        a_n = (a_blk * lax.rsqrt(jnp.sum(a_blk * a_blk, axis=0, keepdims=True))
               ).astype(jnp.bfloat16)
        # cosine similarity (bf16 in, f32 accumulate), restricted to candidates
        sim = lax.dot_general(b_n, a_n, (((0,), (0,)), ((), ())),
                              preferred_element_type=jnp.float32)     # (Nb, size)
        sim = sim + sim_bias
        col_max = jnp.max(sim, axis=0, keepdims=True)                 # (1, size)
        # TODO(synk): on exact float ties this picks the smallest dst index while
        # torch.max picks the first candidate in nearest-distance order.
        dst_row = jnp.min(jnp.where(sim == col_max, rows, nb),
                          axis=0, keepdims=True)                      # (1, size)
        assign = (rows == dst_row).astype(jnp.float32)                # (Nb, size)
        # scatter_reduce sums as a one-hot matmul; counts from a tiny second dot
        sums = lax.dot_general(a_blk, assign, (((1,), (1,)), ((), ())),
                               preferred_element_type=jnp.float32)    # (C, Nb)
        counts = lax.dot_general(jnp.ones((1, size), jnp.float32), assign,
                                 (((1,), (1,)), ((), ())),
                                 preferred_element_type=jnp.float32)  # (1, Nb)
        return sums, counts

    single_chunk = na <= NA_CHUNK
    if single_chunk:
        sim_bias_full, rows_full = build_mask(0, na)   # hoisted across the batch loop

    # --- per-image work: non-unrolled loop caps the live set to one image ----
    def body(bi, carry):
        a = a_ref[bi]                                  # (C, Na)
        bt = b_ref[bi]                                 # (C, Nb)
        b_n = (bt * lax.rsqrt(jnp.sum(bt * bt, axis=0, keepdims=True))
               ).astype(jnp.bfloat16)

        if single_chunk:
            sums, counts = merge_partial(a, sim_bias_full, rows_full, b_n)
        else:
            # bound the dense (Nb, chunk) intermediates for large images
            sums = jnp.zeros((c, nb), jnp.float32)
            counts = jnp.zeros((1, nb), jnp.float32)
            for lo in range(0, na, NA_CHUNK):
                size = min(NA_CHUNK, na - lo)
                sim_bias_c, rows_c = build_mask(lo, size)
                a_blk = lax.slice_in_dim(a, lo, lo + size, axis=1)
                s_part, c_part = merge_partial(a_blk, sim_bias_c, rows_c, b_n)
                sums = sums + s_part
                counts = counts + c_part

        # scatter_reduce(mean, include_self=True): (self + sum) / (1 + count)
        inv = 1.0 / (1.0 + counts)                     # exact reciprocal
        dst = (bt + sums) * inv                        # (C, Nb)

        # fused 1x1 conv (no bias) + folded BatchNorm + SiLU
        y = lax.dot_general(w, dst, (((1,), (0,)), ((), ())),
                            preferred_element_type=jnp.float32)       # (out_ch, Nb)
        y = y * scale_b + bias_b
        out_ref[bi] = y * jax.nn.sigmoid(y)
        return carry

    lax.fori_loop(0, bblk, body, 0)


# ---------------------------------------------------------------------------
# Wrapper (no transposes: input split and output reshape stay channel-major)
# ---------------------------------------------------------------------------
def xcy_forward(x_nchw, conv_w, bn_scale, bn_bias):
    B, C, H, W = x_nchw.shape
    N = H * W
    k = K_GROUP
    assert N % k == 0 and H % 2 == 0 and W % 2 == 0
    out_ch = conv_w.shape[0]

    x_grp = x_nchw.astype(jnp.float32).reshape(B, C, N // k, k)        # (B, C, N/k, k)
    a_cm = x_grp[:, :, :, : k - 1].reshape(B, C, (N // k) * (k - 1))   # (B, C, Na)
    b_cm = x_grp[:, :, :, k - 1]                                       # (B, C, Nb)
    Na, Nb = a_cm.shape[2], b_cm.shape[2]

    nn_t = compute_candidate_nn(N).T.astype(jnp.int32)                 # (TOPK, Na)

    # --- generation-aware block / VMEM sizing -------------------------------
    vmem_cap = _vmem_capacity_bytes()                                  # 64 MiB (v7x) .. 128 MiB
    vmem_limit = min(vmem_cap * 3 // 4, 100 * 1024 * 1024)
    per_image_io = 4 * (C * (Na + Nb) + out_ch * Nb)                   # f32 in+out per image
    na_plane = min(Na, NA_CHUNK)
    fixed = (4 * (4 * Nb * na_plane + 2 * C * (Na + Nb) + (C + out_ch + 4) * Nb)
             + 4 * (out_ch * C + TOPK * Na) + (1 << 20))
    bblk = _pick_batch_block(B, per_image_io, fixed, int(vmem_limit * 0.6))

    out = pl.pallas_call(
        xcy_kernel,
        out_shape=jax.ShapeDtypeStruct((B, out_ch, Nb), jnp.float32),
        grid_spec=pltpu.PrefetchScalarGridSpec(
            num_scalar_prefetch=0,
            grid=(B // bblk,),
            in_specs=[
                pl.BlockSpec((bblk, C, Na), lambda g: (g, 0, 0)),
                pl.BlockSpec((bblk, C, Nb), lambda g: (g, 0, 0)),
                pl.BlockSpec((TOPK, Na), lambda g: (0, 0)),
                pl.BlockSpec((out_ch, C), lambda g: (0, 0)),
                pl.BlockSpec((out_ch, 1), lambda g: (0, 0)),
                pl.BlockSpec((out_ch, 1), lambda g: (0, 0)),
            ],
            out_specs=pl.BlockSpec((bblk, out_ch, Nb), lambda g: (g, 0, 0)),
        ),
        compiler_params=pltpu.CompilerParams(
            dimension_semantics=("parallel",),
            vmem_limit_bytes=int(vmem_limit),
        ),
    )(a_cm, b_cm, nn_t,
      conv_w.astype(jnp.float32),
      bn_scale.reshape(-1, 1).astype(jnp.float32),
      bn_bias.reshape(-1, 1).astype(jnp.float32))

    # TODO(synk): when Nb is not a multiple of 128 the output store is masked;
    # a lane-dense (out_ch, bblk*Nb) slab needs dynamic lane-offset assembly or
    # a wrapper transpose — skipped since the output is the smallest tensor here.
    return out.reshape(B, out_ch, H // 2, W // 2)


# ---------------------------------------------------------------------------
# Pure-JAX reference (mirrors the PyTorch control flow; the similarity step
# uses the same bf16-normalized metrics as the kernel's MXU path so the
# discrete token assignment is compared apples-to-apples)
# ---------------------------------------------------------------------------
def xcy_reference(x_nchw, conv_w, bn_scale, bn_bias):
    B, C, H, W = x_nchw.shape
    N = H * W
    k = K_GROUP
    x_flat = jnp.transpose(x_nchw.reshape(B, C, N), (0, 2, 1)).astype(jnp.float32)
    grp = x_flat[:, : (N // k) * k, :].reshape(B, N // k, k, C)
    a_tok = grp[:, :, : k - 1, :].reshape(B, -1, C)                    # (B, Na, C)
    b_tok = grp[:, :, k - 1, :]                                        # (B, Nb, C)
    Na, Nb = a_tok.shape[1], b_tok.shape[1]

    a_n = (a_tok * jax.lax.rsqrt(jnp.sum(a_tok * a_tok, -1, keepdims=True))
           ).astype(jnp.bfloat16)
    b_n = (b_tok * jax.lax.rsqrt(jnp.sum(b_tok * b_tok, -1, keepdims=True))
           ).astype(jnp.bfloat16)

    nn_idx = compute_candidate_nn(N)                                   # (Na, TOPK)
    sel_b = b_n[:, nn_idx, :]                                          # (B, Na, TOPK, C)
    sim = jnp.einsum('bic,bikc->bik', a_n, sel_b,
                     preferred_element_type=jnp.float32)
    pre = jnp.argmax(sim, axis=-1)                                     # (B, Na)
    dst_idx = nn_idx[jnp.arange(Na)[None, :], pre]                     # (B, Na)

    onehot = (dst_idx[:, :, None] == jnp.arange(Nb)[None, None, :]).astype(jnp.float32)
    sums = jnp.einsum('bin,bic->bnc', onehot, a_tok,
                      precision=jax.lax.Precision.HIGHEST)
    counts = jnp.sum(onehot, axis=1)                                   # (B, Nb)
    dst_out = (b_tok + sums) / (1.0 + counts[..., None])

    y = jnp.einsum('bnc,oc->bno', dst_out, conv_w,
                   precision=jax.lax.Precision.HIGHEST)
    y = y * bn_scale[None, None, :] + bn_bias[None, None, :]
    y = y * jax.nn.sigmoid(y)
    out_ch = conv_w.shape[0]
    return jnp.transpose(y, (0, 2, 1)).reshape(B, out_ch, H // 2, W // 2)


# ---------------------------------------------------------------------------
if __name__ == "__main__":
    B, C, H, W = 2, 4, 16, 16
    out_ch = 8

    key = jax.random.PRNGKey(0)
    kx, kw, kg, kb, km, kv = jax.random.split(key, 6)

    x = jax.random.normal(kx, (B, C, H, W), jnp.float32)

    # Conv(in_ch, out_ch, 1, 1) = Conv2d(1x1, bias=False) + BatchNorm2d + SiLU
    conv_w = 0.1 * jax.random.normal(kw, (out_ch, C), jnp.float32)
    gamma = 1.0 + 0.1 * jax.random.normal(kg, (out_ch,), jnp.float32)
    beta = 0.1 * jax.random.normal(kb, (out_ch,), jnp.float32)
    run_mean = 0.1 * jax.random.normal(km, (out_ch,), jnp.float32)
    run_var = 1.0 + 0.1 * jnp.abs(jax.random.normal(kv, (out_ch,), jnp.float32))
    eps = 1e-3

    bn_scale = gamma / jnp.sqrt(run_var + eps)
    bn_bias = beta - run_mean * bn_scale

    out = xcy_forward(x, conv_w, bn_scale, bn_bias)
    out = jax.block_until_ready(out)

    ref = xcy_reference(x, conv_w, bn_scale, bn_bias)
    assert out.shape == (B, out_ch, H // 2, W // 2)
    max_err = float(jnp.max(jnp.abs(out - ref)))
    assert jnp.allclose(out, ref, rtol=1e-3, atol=1e-3), max_err

    print("KERNEL_OK")
</pallas_src>

<mosaic_0001>
module attributes {stable_mosaic.version = 11 : i64} {
  func.func @xcy_kernel(%arg0: i32, %arg1: memref<1x4x192xf32, #tpu.memory_space<vmem>>, %arg2: memref<1x4x64xf32, #tpu.memory_space<vmem>>, %arg3: memref<8x192xi32, #tpu.memory_space<vmem>>, %arg4: memref<8x4xf32, #tpu.memory_space<vmem>>, %arg5: memref<8x1xf32, #tpu.memory_space<vmem>>, %arg6: memref<8x1xf32, #tpu.memory_space<vmem>>, %arg7: memref<1x8x64xf32, #tpu.memory_space<vmem>>) attributes {dimension_semantics = [#tpu.dimension_semantics<parallel>], iteration_bounds = array<i64: 2>, scalar_prefetch = 0 : i64, scratch_operands = 0 : i64, tpu.core_type = #tpu.core_type<tc>, window_params = [{transform_indices = @transform_0, window_bounds = array<i64: 1, 4, 192>}, {transform_indices = @transform_1, window_bounds = array<i64: 1, 4, 64>}, {pipeline_mode = #tpu.pipeline_mode<synchronous>, transform_indices = @transform_2, window_bounds = array<i64: 8, 192>}, {pipeline_mode = #tpu.pipeline_mode<synchronous>, transform_indices = @transform_3, window_bounds = array<i64: 8, 4>}, {pipeline_mode = #tpu.pipeline_mode<synchronous>, transform_indices = @transform_4, window_bounds = array<i64: 8, 1>}, {pipeline_mode = #tpu.pipeline_mode<synchronous>, transform_indices = @transform_5, window_bounds = array<i64: 8, 1>}, {transform_indices = @transform_6, window_bounds = array<i64: 1, 8, 64>}]} {
    %c0 = arith.constant 0 : index
    %c0_0 = arith.constant 0 : index
    %0 = vector.load %arg3[%c0, %c0_0] : memref<8x192xi32, #tpu.memory_space<vmem>>, vector<8x192xi32>
    %c0_1 = arith.constant 0 : index
    %c0_2 = arith.constant 0 : index
    %1 = vector.load %arg4[%c0_1, %c0_2] : memref<8x4xf32, #tpu.memory_space<vmem>>, vector<8x4xf32>
    %c0_3 = arith.constant 0 : index
    %c0_4 = arith.constant 0 : index
    %2 = vector.load %arg5[%c0_3, %c0_4] : memref<8x1xf32, #tpu.memory_space<vmem>>, vector<8x1xf32>
    %3 = vector.shape_cast %2 : vector<8x1xf32> to vector<8x1xf32>
    %4 = vector.broadcast %3 : vector<8x1xf32> to vector<8x64xf32>
    %c0_5 = arith.constant 0 : index
    %c0_6 = arith.constant 0 : index
    %5 = vector.load %arg6[%c0_5, %c0_6] : memref<8x1xf32, #tpu.memory_space<vmem>>, vector<8x1xf32>
    %6 = vector.shape_cast %5 : vector<8x1xf32> to vector<8x1xf32>
    %7 = vector.broadcast %6 : vector<8x1xf32> to vector<8x64xf32>
    %8 = vector.extract_strided_slice %0 {offsets = [0, 0], sizes = [8, 192], strides = [1, 1]} : vector<8x192xi32> to vector<8x192xi32>
    %9 = tpu.iota {dimensions = array<i32: 0>} : vector<64x192xi32>
    %10 = vector.extract_strided_slice %8 {offsets = [0, 0], sizes = [1, 192], strides = [1, 1]} : vector<8x192xi32> to vector<1x192xi32>
    %11 = vector.broadcast %10 : vector<1x192xi32> to vector<64x192xi32>
    %12 = arith.cmpi eq, %9, %11 : vector<64x192xi32>
    %13 = vector.extract_strided_slice %8 {offsets = [1, 0], sizes = [1, 192], strides = [1, 1]} : vector<8x192xi32> to vector<1x192xi32>
    %14 = vector.broadcast %13 : vector<1x192xi32> to vector<64x192xi32>
    %15 = arith.cmpi eq, %9, %14 : vector<64x192xi32>
    %16 = arith.ori %12, %15 : vector<64x192xi1>
    %17 = vector.extract_strided_slice %8 {offsets = [2, 0], sizes = [1, 192], strides = [1, 1]} : vector<8x192xi32> to vector<1x192xi32>
    %18 = vector.broadcast %17 : vector<1x192xi32> to vector<64x192xi32>
    %19 = arith.cmpi eq, %9, %18 : vector<64x192xi32>
    %20 = arith.ori %16, %19 : vector<64x192xi1>
    %21 = vector.extract_strided_slice %8 {offsets = [3, 0], sizes = [1, 192], strides = [1, 1]} : vector<8x192xi32> to vector<1x192xi32>
    %22 = vector.broadcast %21 : vector<1x192xi32> to vector<64x192xi32>
    %23 = arith.cmpi eq, %9, %22 : vector<64x192xi32>
    %24 = arith.ori %20, %23 : vector<64x192xi1>
    %25 = vector.extract_strided_slice %8 {offsets = [4, 0], sizes = [1, 192], strides = [1, 1]} : vector<8x192xi32> to vector<1x192xi32>
    %26 = vector.broadcast %25 : vector<1x192xi32> to vector<64x192xi32>
    %27 = arith.cmpi eq, %9, %26 : vector<64x192xi32>
    %28 = arith.ori %24, %27 : vector<64x192xi1>
    %29 = vector.extract_strided_slice %8 {offsets = [5, 0], sizes = [1, 192], strides = [1, 1]} : vector<8x192xi32> to vector<1x192xi32>
    %30 = vector.broadcast %29 : vector<1x192xi32> to vector<64x192xi32>
    %31 = arith.cmpi eq, %9, %30 : vector<64x192xi32>
    %32 = arith.ori %28, %31 : vector<64x192xi1>
    %33 = vector.extract_strided_slice %8 {offsets = [6, 0], sizes = [1, 192], strides = [1, 1]} : vector<8x192xi32> to vector<1x192xi32>
    %34 = vector.broadcast %33 : vector<1x192xi32> to vector<64x192xi32>
    %35 = arith.cmpi eq, %9, %34 : vector<64x192xi32>
    %36 = arith.ori %32, %35 : vector<64x192xi1>
    %37 = vector.extract_strided_slice %8 {offsets = [7, 0], sizes = [1, 192], strides = [1, 1]} : vector<8x192xi32> to vector<1x192xi32>
    %38 = vector.broadcast %37 : vector<1x192xi32> to vector<64x192xi32>
    %39 = arith.cmpi eq, %9, %38 : vector<64x192xi32>
    %40 = arith.ori %36, %39 : vector<64x192xi1>
    %cst = arith.constant 0.000000e+00 : f32
    %cst_7 = arith.constant -3.000000e+38 : f32
    %41 = vector.broadcast %cst : f32 to vector<64x192xf32>
    %42 = vector.broadcast %cst_7 : f32 to vector<64x192xf32>
    %43 = arith.select %40, %41, %42 : vector<64x192xi1>, vector<64x192xf32>
    %c0_i32 = arith.constant 0 : i32
    %44 = arith.index_cast %c0_i32 : i32 to index
    %c0_8 = arith.constant 0 : index
    %c0_9 = arith.constant 0 : index
    %45 = vector.load %arg1[%44, %c0_8, %c0_9] : memref<1x4x192xf32, #tpu.memory_space<vmem>>, vector<1x4x192xf32>
    %46 = vector.shape_cast %45 : vector<1x4x192xf32> to vector<4x192xf32>
    %47 = arith.index_cast %c0_i32 : i32 to index
    %c0_10 = arith.constant 0 : index
    %c0_11 = arith.constant 0 : index
    %48 = vector.load %arg2[%47, %c0_10, %c0_11] : memref<1x4x64xf32, #tpu.memory_space<vmem>>, vector<1x4x64xf32>
    %49 = vector.shape_cast %48 : vector<1x4x64xf32> to vector<4x64xf32>
    %50 = arith.mulf %49, %49 : vector<4x64xf32>
    %cst_12 = arith.constant dense<0.000000e+00> : vector<64xf32>
    %51 = vector.multi_reduction <add>, %50, %cst_12 [0] : vector<4x64xf32> to vector<64xf32>
    %52 = vector.shape_cast %51 : vector<64xf32> to vector<1x64xf32>
    %53 = math.rsqrt %52 : vector<1x64xf32>
    %54 = vector.broadcast %53 : vector<1x64xf32> to vector<4x64xf32>
    %55 = arith.mulf %49, %54 : vector<4x64xf32>
    %56 = arith.truncf %55 : vector<4x64xf32> to vector<4x64xbf16>
    %57 = arith.mulf %46, %46 : vector<4x192xf32>
    %cst_13 = arith.constant dense<0.000000e+00> : vector<192xf32>
    %58 = vector.multi_reduction <add>, %57, %cst_13 [0] : vector<4x192xf32> to vector<192xf32>
    %59 = vector.shape_cast %58 : vector<192xf32> to vector<1x192xf32>
    %60 = math.rsqrt %59 : vector<1x192xf32>
    %61 = vector.broadcast %60 : vector<1x192xf32> to vector<4x192xf32>
    %62 = arith.mulf %46, %61 : vector<4x192xf32>
    %63 = arith.truncf %62 : vector<4x192xf32> to vector<4x192xbf16>
    %cst_14 = arith.constant dense<0.000000e+00> : vector<64x192xf32>
    %64 = tpu.matmul %56, %63, %cst_14 {dimension_numbers = #tpu.dot_dimension_numbers<[0], [0], [1], [1], [0, 1, 1, 1], [], []>} : vector<4x64xbf16>, vector<4x192xbf16>, vector<64x192xf32> -> vector<64x192xf32>
    %65 = arith.addf %64, %43 : vector<64x192xf32>
    %cst_15 = arith.constant dense<0xFF800000> : vector<192xf32>
    %66 = vector.multi_reduction <maximumf>, %65, %cst_15 [0] : vector<64x192xf32> to vector<192xf32>
    %67 = vector.shape_cast %66 : vector<192xf32> to vector<1x192xf32>
    %68 = vector.broadcast %67 : vector<1x192xf32> to vector<64x192xf32>
    %69 = arith.cmpf oeq, %65, %68 : vector<64x192xf32>
    %c64_i32 = arith.constant 64 : i32
    %70 = vector.broadcast %c64_i32 : i32 to vector<64x192xi32>
    %71 = arith.select %69, %9, %70 : vector<64x192xi1>, vector<64x192xi32>
    %cst_16 = arith.constant dense<2147483647> : vector<192xi32>
    %72 = vector.multi_reduction <minsi>, %71, %cst_16 [0] : vector<64x192xi32> to vector<192xi32>
    %73 = vector.shape_cast %72 : vector<192xi32> to vector<1x192xi32>
    %74 = vector.broadcast %73 : vector<1x192xi32> to vector<64x192xi32>
    %75 = arith.cmpi eq, %9, %74 : vector<64x192xi32>
    %76 = arith.extui %75 : vector<64x192xi1> to vector<64x192xi32>
    %77 = arith.sitofp %76 : vector<64x192xi32> to vector<64x192xf32>
    %cst_17 = arith.constant dense<0.000000e+00> : vector<4x64xf32>
    %78 = tpu.matmul %46, %77, %cst_17 {dimension_numbers = #tpu.dot_dimension_numbers<[1], [1], [0], [0], [0, 0, 1, 0], [], []>} : vector<4x192xf32>, vector<64x192xf32>, vector<4x64xf32> -> vector<4x64xf32>
    %cst_18 = arith.constant 1.000000e+00 : f32
    %79 = vector.broadcast %cst_18 : f32 to vector<1x192xf32>
    %cst_19 = arith.constant dense<0.000000e+00> : vector<1x64xf32>
    %80 = tpu.matmul %79, %77, %cst_19 {dimension_numbers = #tpu.dot_dimension_numbers<[1], [1], [0], [0], [0, 0, 1, 0], [], []>} : vector<1x192xf32>, vector<64x192xf32>, vector<1x64xf32> -> vector<1x64xf32>
    %cst_20 = arith.constant 1.000000e+00 : f32
    %81 = vector.broadcast %cst_20 : f32 to vector<1x64xf32>
    %82 = arith.addf %81, %80 : vector<1x64xf32>
    %cst_21 = arith.constant 1.000000e+00 : f32
    %83 = vector.broadcast %cst_21 : f32 to vector<1x64xf32>
    %84 = arith.divf %83, %82 : vector<1x64xf32>
    %85 = arith.addf %49, %78 : vector<4x64xf32>
    %86 = vector.broadcast %84 : vector<1x64xf32> to vector<4x64xf32>
    %87 = arith.mulf %85, %86 : vector<4x64xf32>
    %cst_22 = arith.constant dense<0.000000e+00> : vector<8x64xf32>
    %88 = tpu.matmul %1, %87, %cst_22 {dimension_numbers = #tpu.dot_dimension_numbers<[1], [0], [0], [1], [0, 0, 1, 1], [], []>} : vector<8x4xf32>, vector<4x64xf32>, vector<8x64xf32> -> vector<8x64xf32>
    %89 = arith.mulf %88, %4 : vector<8x64xf32>
    %90 = arith.addf %89, %7 : vector<8x64xf32>
    %91 = arith.negf %90 : vector<8x64xf32>
    %92 = math.exp %91 : vector<8x64xf32>
    %cst_23 = arith.constant 1.000000e+00 : f32
    %93 = vector.broadcast %cst_23 : f32 to vector<8x64xf32>
    %94 = arith.addf %93, %92 : vector<8x64xf32>
    %95 = arith.divf %93, %94 : vector<8x64xf32>
    %96 = arith.mulf %90, %95 : vector<8x64xf32>
    %97 = arith.index_cast %c0_i32 : i32 to index
    %c0_24 = arith.constant 0 : index
    %c0_25 = arith.constant 0 : index
    %98 = vector.load %arg7[%97, %c0_24, %c0_25] : memref<1x8x64xf32, #tpu.memory_space<vmem>>, vector<1x8x64xf32>
    %99 = vector.shape_cast %98 : vector<1x8x64xf32> to vector<8x64xf32>
    %100 = vector.shape_cast %96 : vector<8x64xf32> to vector<1x8x64xf32>
    tpu.vector_store %arg7[%97, %c0_24, %c0_25], %100 {strides = array<i32>} : memref<1x8x64xf32, #tpu.memory_space<vmem>>, vector<1x8x64xf32>,
    %c1_i32 = arith.constant 1 : i32
    return
  }
  func.func @transform_0(%arg0: i32) -> (i32, i32, i32) {
    %c0_i32 = arith.constant 0 : i32
    %c0_i32_0 = arith.constant 0 : i32
    %c0_i32_1 = arith.constant 0 : i32
    return %arg0, %c0_i32, %c0_i32_0 : i32, i32, i32
  }
  func.func @transform_1(%arg0: i32) -> (i32, i32, i32) {
    %c0_i32 = arith.constant 0 : i32
    %c0_i32_0 = arith.constant 0 : i32
    %c0_i32_1 = arith.constant 0 : i32
    return %arg0, %c0_i32, %c0_i32_0 : i32, i32, i32
  }
  func.func @transform_2(%arg0: i32) -> (i32, i32) {
    %c0_i32 = arith.constant 0 : i32
    %c0_i32_0 = arith.constant 0 : i32
    %c0_i32_1 = arith.constant 0 : i32
    return %c0_i32, %c0_i32_0 : i32, i32
  }
  func.func @transform_3(%arg0: i32) -> (i32, i32) {
    %c0_i32 = arith.constant 0 : i32
    %c0_i32_0 = arith.constant 0 : i32
    %c0_i32_1 = arith.constant 0 : i32
    return %c0_i32, %c0_i32_0 : i32, i32
  }
  func.func @transform_4(%arg0: i32) -> (i32, i32) {
    %c0_i32 = arith.constant 0 : i32
    %c0_i32_0 = arith.constant 0 : i32
    %c0_i32_1 = arith.constant 0 : i32
    return %c0_i32, %c0_i32_0 : i32, i32
  }
  func.func @transform_5(%arg0: i32) -> (i32, i32) {
    %c0_i32 = arith.constant 0 : i32
    %c0_i32_0 = arith.constant 0 : i32
    %c0_i32_1 = arith.constant 0 : i32
    return %c0_i32, %c0_i32_0 : i32, i32
  }
  func.func @transform_6(%arg0: i32) -> (i32, i32, i32) {
    %c0_i32 = arith.constant 0 : i32
    %c0_i32_0 = arith.constant 0 : i32
    %c0_i32_1 = arith.constant 0 : i32
    return %arg0, %c0_i32, %c0_i32_0 : i32, i32, i32
  }
}

</mosaic_0001>

<bundles_post_ra>
// kernel: tpu_custom_call.1
= control target key start
LH: loop header
LB: loop body
LE: loop exit
PB: predicated region body
PF: predicated region fallthrough
CT: control target
= control target key end

     0   :  { %11 = vsyncpa [#allocation3], 0  ;;  %s2759_s0 = inlined_call_operand.vmem [shape: f32[2,4,192], index: 0, kind: input, shape index: {}]   ;;  %s2760_s1 = inlined_call_operand.hbm [shape: f32[2,4,64], index: 1, kind: input, shape index: {}]   ;;  %s2761_s2 = inlined_call_operand.vmem [shape: s32[8,192], index: 2, kind: input, shape index: {}]   ;;  %s2762_s3 = inlined_call_operand.vmem [shape: f32[8,4], index: 3, kind: input, shape index: {}]   ;;  %s2763_s4 = inlined_call_operand.vmem [shape: f32[8,1], index: 4, kind: input, shape index: {}]   ;;  %s2764_s5 = inlined_call_operand.vmem [shape: f32[8,1], index: 5, kind: input, shape index: {}]   ;;  %s2765_s6 = inlined_call_operand.hbm [shape: f32[2,8,64], index: 6, kind: output, shape index: {}]  }
   0x1   :  { %13 = vsyncpa [#allocation3 + $0x1], 0 }
   0x2   :  { %14 = vsyncpa [#allocation4], 0 }
   0x3   :  { %16 = vsyncpa [#allocation4 + $0x1], 0  ;;  %s1646_s21 = smov 0   ;;  %s1648_s22 = smov 0  }
   0x4   :  { %s1650_s23 = smov 0   ;;  %s1652_s24 = smov 0  }
   0x5 LB: > { %s1667_s25 = sadd.s32 4294967295, %s1601_s24   ;;  %s1316_s26 = sadd.s32 4294967294, %s1601_s24   ;;  %s1601_s24 = sphi %s1652_s24, %s2975_s24   ;;  %s1597_s23 = sphi %s1650_s23, %s2974_s23   ;;  %s1593_s22 = sphi %s1648_s22, %s2973_s22   ;;  %s1589_s21 = sphi %s1646_s21, %s2972_s21  }
   0x6   : > { %s1671_s27 = sadd.s32 1, %s1601_s24   ;;  %s55_s28 = sadd.s32 1, %s1597_s23 }
   0x7   : > { %s52_s29 = ssub.s32 %s1601_s24, %s1671_s27  ;;  %p62_p0 = scmp.ne.s32.totalorder %s1597_s23, %s1593_s22 }
   0x8   : > { %p53_p1 = scmp.eq.s32.totalorder %s52_s29, 0  ;;  %p63_p2 = scmp.eq.s32.totalorder %s1601_s24, 0 }
   0x9   : > { %p68_p3 = scmp.ne.s32.totalorder %s1593_s22, %s1589_s21  ;;  %p69_p4 = scmp.eq.s32.totalorder %s1667_s25, 0 }
   0xa   : > { %s1683_s30 = scalar_select %p53_p1, %s1597_s23, %s55_s28  }
   0xb   : > { %p1685_p5 = por %p63_p2, %p62_p0  ;;  %p1689_p6 = por %p69_p4, %p68_p3 }
   0xc   : > { %p176_p7 = scmp.eq.s32.totalorder %s1667_s25, 1  ;;  %p182_p8 = scmp.eq.s32.totalorder %s1316_s26, 1 }
   0xd   : > { %p1448_p10 = scmp.lt.s32.totalorder %s1601_s24, 2  ;;  %s222_s11 = sand.u32 1, %s1597_s23  }
   0xe   : > { %p1696_p11 = por %p176_p7, %p62_p0  ;;  %p1700_p12 = por %p182_p8, %p68_p3 }
   0xf   : > { %s1320_s12 = sshll.u32 %s1601_s24, 6  ;;  %s1319_s13 = sshll.u32 %s222_s11, 2 }
  0x10   : > { %s2772_s9 = scalar_select %p1696_p11, 1, 0 }
  0x11   : > { %s2773_s10 = scalar_select %p1700_p12, 1, 0 }
  0x12   : > { %s1709_s16 = scalar_lea.hbm %s2760_s1, %s1320_s12  ;;  %s226_s17 = scalar_lea.vmem [#allocation2], %s1319_s13 }
  0x13   : > { %s233_s18 = sshll.u32 %s226_s17, 4  ;;  %p1713_p13 = pnand %p1448_p10, %p1685_p5  ;;  %s1717_s18 = int_to_ptr.vmem [resolvable:$true] %s233_s18 }
  0x14   : > { %s223_s20 = scalar_lea.sflag [#allocation3], %s222_s11  ;;  %s1505_s26 = scalar_lea.hbm %s1709_s16, 64 }
  0x15   : > { %p1506_p2 = scmp.ne.s32.totalorder %s1709_s16, %s1505_s26  ;;  %p1507_p3 = pneg %p1713_p13 }
  0x16   : > { %s1510_s7 = scalar_lea.hbm %s2760_s1, 128  ;;  %p1511_p5 = scmp.lt.u32.totalorder %s1709_s16, %s2760_s1 }
  0x17   : > { %p1508_p4 = pnand %p1507_p3, %p1506_p2  ;;  %p1512_p8 = scmp.lt.u32.totalorder %s1510_s7, %s1505_s26 }
  0x18   : > { %p1514_p9 = scmp.lt.u32.totalorder %s1505_s26, %s1709_s16 }
  0x19   : > { %p1509_p7 = pneg %p1508_p4  ;;  %p1513_p10 = por %p1512_p8, %p1511_p5 }
  0x1b   : > { %p1515_p0 = por %p1514_p9, %p1513_p10 }
  0x1d   : > { %p1516_p1 = pnand %p1515_p0, %p1509_p7 }
  0x1f   : > { %1519 = shalt.err (!%p1516_p1)
}
  0x20   : > { %s1520_s11 = scalar_lea.vmem %s1717_s18, 64  ;;  %s1603_s14 = smov [#allocation2]  }
  0x21   : > { %p1521_p2 = scmp.ne.s32.totalorder %s1717_s18, %s1520_s11  ;;  %s1525_s15 = sshll.u32 %s1603_s14, 4  ;;  %s1526_s15 = int_to_ptr.vmem [resolvable:$false] %s1525_s15 }
  0x22   : > { %s1527_s17 = scalar_lea.vmem %s1526_s15, 128  ;;  %p1528_p11 = scmp.lt.s32.totalorder %s1717_s18, %s1526_s15 }
  0x23   : > { %p1523_p4 = pnand %p1521_p2, %p1507_p3  ;;  %p1529_p5 = scmp.lt.s32.totalorder %s1527_s17, %s1520_s11 }
  0x25   : > { %p1524_p12 = pneg %p1523_p4  ;;  %p1530_p8 = por %p1529_p5, %p1528_p11 }
  0x27   : > { %p1531_p9 = pnand %p1530_p8, %p1524_p12 }
  0x29   : > { %1534 = shalt.err (!%p1531_p9)
}
  0x2a   : > { %1443 = dma.hbm_to_vmem [thread:$0]  (!%p1713_p13), %s1709_s16, 64, %s1717_s18, %s223_s20  }
  0x2b   : > { %p2775_p0 = scmp.lt.s32.totalorder %s1601_s24, 3  ;;  %p2776_p1 = scmp.ge.s32.totalorder %s1601_s24, 1 }
  0x2d   : > { %p239_p3 = pnand %p2776_p1, %p2775_p0 }
  0x2e   : > { %s1751_s26 = sand.u32 (!%p239_p3), 1, %s1593_s22  }
  0x2f   : > { %242 = sbr.rel (%p239_p3) target bundleno = 1003 (0x3eb), region = 44  ;;  %s1322_s28 = sshll.u32 (!%p239_p3), %s1751_s26, 2 }
  0x30   : > { %s245_s29 = scalar_lea.sflag (!%p239_p3), [#allocation3], %s1751_s26  ;;  %s1755_s7 = scalar_lea.vmem (!%p239_p3), [#allocation2], %s1322_s28 }
  0x36   : > { %1580 = dma.done.wait (%p1689_p6), %s245_s29, 64  }
  0x37   : > { %1582 = vsyncadd (%p1689_p6), %s245_s29, 4294967232  ;;  %p282_p11 = scmp.lt.s32.totalorder %s1667_s25, 1  ;;  %v1604_v0 = vmov 0   ;;  %v633_v1 = vld [vmem:[%s1755_s7] sm:$0xf]  ;;  %vm635_vm0 = vcmask 519168   ;;  %v303_v42 = vlaneseq }
  0x38   : > { %745 = vmatprep.mubr.bf16.mxu0 %v1604_v0  ;;  %1489 = vset.pattern.permute.xlu1 %v1604_v0  ;;  %vm2768_vm1 = vcmask 1043456   ;;  %v634_v3 = vmul.f32 %v633_v1, %v633_v1  ;;  %vm706_vm2 = vcmask 1041408   ;;  %vm2767_vm3 = vcmask 31744   ;;  %v1789_v46 = vld [vmem:[%s2761_s2] sm:$0xff]  ;;  %v1802_v50 = vld [vmem:[%s2761_s2 + $0x8] sm:$0xff]  ;;  %s1385_s19 = sshll.u32 %s1667_s25, 7 }
  0x39   : > { %s283_s16 = scalar_select %p282_p11, %s1667_s25, 1  ;;  %v1780_v43 = vshrl.u32 %v303_v42, 7  ;;  %v2777_v61 = vmov 0  ;;  %v2879_v63 = vmov 0 }
  0x3a   : > { %v636_v5 = vsel %vm635_vm0, %v634_v3, 0.0  ;;  %v2781_v3 = vmov 0  ;;  %s2714_s11 = scalar_lea.hbm %s2765_s6, %s1385_s19  ;;  %s1221_s14 = scalar_lea.sflag [#allocation4], %s1751_s26 }
  0x3b   : > { %s1388_s18 = sshll.u32 %s283_s16, 3  ;;  %v637_v8 = vrot.slane %v636_v5, 4  ;;  %v1783_v44 = vsub.s32 0, %v1780_v43  ;;  %v338_v45 = vsub.s32 1, %v1780_v43  ;;  %v378_v47 = vsub.s32 2, %v1780_v43  ;;  %p2969_p12 = scmp.ne.s32.totalorder %s2772_s9, 0 }
  0x3c   : > { %s1766_s12 = scalar_lea.vmem %s2759_s0, %s1388_s18  ;;  %v418_v52 = vsub.s32 3, %v1780_v43  ;;  %v1820_v55 = vadd.s32 8, %v1780_v43  ;;  %v458_v59 = vsub.s32 4, %v1780_v43  ;;  %v1855_v60 = vadd.s32 16, %v1780_v43  ;;  %s1610_s25 = smov [#allocation5]  }
  0x3d   : > { %v1770_v2 = vld [vmem:[%s1766_s12] sm:$0xff]  ;;  %v638_v11 = vadd.f32 %v637_v8, %v636_v5  ;;  %v1794_v48 = vrot.slane %v1789_v46, %v1783_v44  ;;  %v1797_v49 = vrot.slane %v1789_v46, %v338_v45  ;;  %v1805_v51 = vrot.slane %v1789_v46, %v378_v47  ;;  %s1539_s17 = sshll.u32 %s1610_s25, 4  ;;  %s1540_s17 = int_to_ptr.vmem [resolvable:$false] %s1539_s17 }
  0x3e   : > { %v646_v4 = vmul.f32 %v1770_v2, %v1770_v2  ;;  %v1814_v53 = vrot.slane %v1802_v50, %v1783_v44  ;;  %v1817_v54 = vrot.slane %v1802_v50, %v338_v45  ;;  %v1825_v56 = vrot.slane %v1789_v46, %v418_v52  ;;  %s1541_s28 = scalar_lea.vmem %s1540_s17, 256 }
  0x3f   : > { %v639_v14 = vrot.slane %v638_v11, 2  ;;  %vm320_vm4 = vcmp.eq.s32.totalorder %v1780_v43, %v1794_v48  ;;  %vm344_vm5 = vcmp.eq.s32.totalorder %v1780_v43, %v1797_v49  ;;  %vm384_vm7 = vcmp.eq.s32.totalorder %v1780_v43, %v1805_v51 }
  0x40   : > { %v648_v6 = vcombine.high %v646_v4, %v646_v4  ;;  %v651_v7 = vsel %vm2768_vm1, %v646_v4, 0.0  ;;  %vm360_vm6 = vmor %vm320_vm4, %vm344_vm5  ;;  %v1828_v57 = vrot.slane %v1802_v50, %v378_v47  ;;  %vm321_vm8 = vcmp.eq.s32.totalorder %v1780_v43, %v1814_v53 }
  0x41   : > { %v652_v9 = vrot.slane %v651_v7, 4  ;;  %v640_v17 = vadd.f32 %v639_v14, %v638_v11  ;;  %vm345_vm9 = vcmp.eq.s32.totalorder %v1780_v43, %v1817_v54  ;;  %vm322_vm10 = vcmp.eq.s32.totalorder %v1820_v55, %v1794_v48  ;;  %vm400_vm12 = vmor %vm360_vm6, %vm384_vm7 }
  0x42   : > { %v658_v10 = vsel %vm635_vm0, %v648_v6, 0.0  ;;  %vm346_vm11 = vcmp.eq.s32.totalorder %v1820_v55, %v1797_v49  ;;  %v1839_v58 = vrot.slane %v1802_v50, %v418_v52  ;;  %vm323_vm13 = vcmp.eq.s32.totalorder %v1820_v55, %v1814_v53  ;;  %vm361_vm0 = vmor %vm321_vm8, %vm345_vm9 }
  0x43   : > { %v653_v12 = vadd.f32 %v652_v9, %v651_v7  ;;  %v659_v13 = vrot.slane %v658_v10, 4  ;;  %v641_v20 = vrot.slane %v640_v17, 1  ;;  %vm347_vm14 = vcmp.eq.s32.totalorder %v1820_v55, %v1817_v54  ;;  %vm362_vm4 = vmor %vm322_vm10, %vm346_vm11 }
  0x44   : > { %vm424_vm15 = vcmp.eq.s32.totalorder %v1780_v43, %v1825_v56  ;;  %vm386_vm5 = vcmp.eq.s32.totalorder %v1820_v55, %v1805_v51  ;;  %vm363_vm6 = vmor %vm323_vm13, %vm347_vm14  ;;  %vm387_vm7 = vcmp.eq.s32.totalorder %v1820_v55, %v1828_v57  ;;  %vm425_vm9 = vcmp.eq.s32.totalorder %v1780_v43, %v1839_v58 }
  0x45   : > { %v654_v15 = vrot.slane %v653_v12, 2  ;;  %v660_v16 = vadd.f32 %v659_v13, %v658_v10  ;;  %v642_v23 = vadd.f32 %v641_v20, %v640_v17  ;;  %vm402_vm10 = vmor %vm362_vm4, %vm386_vm5  ;;  %vm426_vm11 = vcmp.eq.s32.totalorder %v1820_v55, %v1825_v56 }
  0x46   : > { %v1866_v62 = vadd.s32 24, %v1780_v43  ;;  %vm403_vm13 = vmor %vm363_vm6, %vm387_vm7  ;;  %vm427_vm14 = vcmp.eq.s32.totalorder %v1820_v55, %v1839_v58  ;;  %vm349_vm4 = vcmp.eq.s32.totalorder %v1855_v60, %v1817_v54  ;;  %v2783_v4 = vmov 0 }
  0x47   : > { %v655_v18 = vadd.f32 %v654_v15, %v653_v12  ;;  %v661_v19 = vrot.slane %v660_v16, 2  ;;  %1491 = vrsqrt.f32 %v642_v23  ;;  %vm1892_vm5 = vmor %vm403_vm13, %vm427_vm14  ;;  %vm389_vm13 = vcmp.eq.s32.totalorder %v1855_v60, %v1828_v57 }
  0x48   : > { %v2784_v4 = vsel %vm1892_vm5, 4294967295, %v2783_v4  ;;  %vm326_vm6 = vcmp.eq.s32.totalorder %v1866_v62, %v1794_v48  ;;  %vm350_vm7 = vcmp.eq.s32.totalorder %v1866_v62, %v1797_v49  ;;  %v498_v5 = vsub.s32 5, %v1780_v43 }
  0x49   : > { %v656_v21 = vrot.slane %v655_v18, 1  ;;  %v662_v22 = vadd.f32 %v661_v19, %v660_v16  ;;  %vm366_vm5 = vmor %vm326_vm6, %vm350_vm7  ;;  %v2785_v6 = vmov 0  ;;  %vm429_vm7 = vcmp.eq.s32.totalorder %v1855_v60, %v1839_v58 }
  0x4a   : > { %v2788_v7 = vmov 0  ;;  %v2791_v8 = vmov 0  ;;  %v2794_v9 = vmov 0  ;;  %v1948_v10 = vadd.s32 32, %v1780_v43 }
  0x4b   : > { %v657_v24 = vadd.f32 %v656_v21, %v655_v18  ;;  %v663_v25 = vrot.slane %v662_v22, 1  ;;  %v1953_v11 = vrot.slane %v1802_v50, %v498_v5  ;;  %v1958_v12 = vrot.slane %v1789_v46, %v498_v5 }
  0x4c   : > { %v2796_v13 = vmov 0  ;;  %v2798_v14 = vmov 0  ;;  %v2800_v15 = vmov 0  ;;  %v538_v16 = vsub.s32 6, %v1780_v43 }
  0x4d   : > { %v664_v26 = vadd.f32 %v663_v25, %v662_v22  ;;  %1493 = vrsqrt.f32 %v657_v24  ;;  %v2803_v17 = vmov 0  ;;  %v2806_v18 = vmov 0 }
  0x4e   : > { %v2809_v19 = vmov 0  ;;  %v2812_v20 = vmov 0  ;;  %v2818_v22 = vmov 0  ;;  %v2048_v23 = vrot.slane %v1789_v46, %v538_v16 }
  0x4f   : > { %1495 = vrsqrt.f32 %v664_v26  ;;  %v2059_v25 = vrot.slane %v1802_v50, %v538_v16  ;;  %v2066_v26 = vadd.s32 40, %v1780_v43  ;;  %v2861_v45 = vmov 0 }
  0x50   : > { %v956_v47 = vcombine.high %v1770_v2, %v1770_v2  ;;  %v2892_v5 = vmov 0 }
  0x51   : > { %v1492_v27 = vpop.eup %1491 }
  0x52   : > { %v644_v29 = vmul.f32 %v1492_v27, %v633_v1  ;;  %v1882_v1 = vrot.slane %v1789_v46, %v458_v59 }
  0x54   : > { %v645_v31 = vpack.c.bf16 %v644_v29, %v644_v29  ;;  %vm464_vm14 = vcmp.eq.s32.totalorder %v1780_v43, %v1882_v1 }
  0x56   : > { %677 = vxpose.xlu0.c.b16.start.end [1/1] (short) (narrow) %v645_v31, 64  ;;  %v1605_v31 = vmov 1.0  }
  0x57   : > { %v1494_v28 = vpop.eup %1493 }
  0x59   : > { %v1496_v30 = vpop.eup %1495 }
  0x5a   : > { %v669_v32 = vcombine.low %v1494_v28, %v1496_v30  ;;  %v2079_v28 = vadd.s32 48, %v1780_v43  ;;  %v2827_v30 = vmov 0 }
  0x5c   : > { %v671_v33 = vmul.f32 %v669_v32, %v1770_v2  ;;  %v2829_v32 = vmov 0 }
  0x5e   : > { %v673_v34 = vcombine.high %v671_v33, %v671_v33  ;;  %v675_v35 = vpack.c.bf16 %v671_v33, %v671_v33  ;;  %v578_v33 = vsub.s32 7, %v1780_v43 }
  0x5f   : > { %1488 = vset.pattern.permute.xlu0 %v1604_v0 }
  0x60   : > { %v676_v36 = vpack.c.bf16 %v673_v34, %v673_v34  ;;  %v708_v37 = vsel %vm706_vm2, %v675_v35, 0  ;;  %v2832_v34 = vmov 0  ;;  %v2834_v35 = vmov 0 }
  0x61   : > { %v2217_v42 = vrot.slane %v1802_v50, %v578_v33  ;;  %v2230_v52 = vrot.slane %v1789_v46, %v578_v33  ;;  %v2867_v46 = vmov 0 }
  0x62   : > { %1326 = vmatprep.subr.msk.bf16.mxu0 %vm706_vm2, %v676_v36  ;;  %vm385_vm2 = vcmp.eq.s32.totalorder %v1780_v43, %v1828_v57  ;;  %v2838_v36 = vmov 0 }
  0x63   : > { %714 = vmatpush1.bf16.msra.mxu0 %v708_v37  ;;  %vm401_vm8 = vmor %vm361_vm0, %vm385_vm2  ;;  %vm325_vm2 = vcmp.eq.s32.totalorder %v1855_v60, %v1814_v53  ;;  %v2841_v37 = vmov 0 }
  0x64   : > { %vm1870_vm1 = vmor %vm401_vm8, %vm425_vm9  ;;  %vm388_vm9 = vcmp.eq.s32.totalorder %v1855_v60, %v1805_v51 }
  0x65   : > { %vm1884_vm0 = vmor %vm402_vm10, %vm426_vm11 }
  0x66   : > { %v2782_v3 = vsel %vm1884_vm0, 4294967295, %v2781_v3  ;;  %vm365_vm11 = vmor %vm325_vm2, %vm349_vm4  ;;  %vm390_vm0 = vcmp.eq.s32.totalorder %v1866_v62, %v1805_v51  ;;  %vm428_vm2 = vcmp.eq.s32.totalorder %v1855_v60, %v1825_v56 }
  0x67   : > { %vm405_vm6 = vmor %vm365_vm11, %vm389_vm13  ;;  %vm2793_vm13 = vnez %v2784_v4  ;;  %v2888_v4 = vmov 0 }
  0xbc   : > { %v685_v38 = vpop.trf.xlu0 }
  0xbd   : > { %1327 = vmatmul.mubr.msk.bf16.vlgmr.msra.gmra.mrb[0].mxu0 %vm2767_vm3, %v685_v38  ;;  %v2847_v38 = vmov 0 }
  0xbe   : > { %755 = vmatprep.mubr.bf16.mxu0 %v1604_v0 }
  0xc0   : > { %v686_v39 = vpop.trf.xlu0 }
  0xc4   : > { %v687_v40 = vpop.trf.xlu0 }
  0xc5   : > { %1328 = vmatmul.mubr.msk.bf16.gmra.mrb[4].mxu0 %vm2767_vm3, %v686_v39  ;;  %v2850_v39 = vmov 0 }
  0xc6   : > { %765 = vmatprep.mubr.bf16.mxu0 %v1604_v0 }
  0xc8   : > { %v688_v41 = vpop.trf.xlu0 }
  0xcd   : > { %1329 = vmatmul.mubr.msk.bf16.gmra.mrb[8].mxu0 %vm2767_vm3, %v687_v40  ;;  %v2854_v40 = vmov 0 }
  0xce   : > { %775 = vmatprep.mubr.bf16.mxu0 %v1604_v0  ;;  %v1875_v0 = vrot.slane %v1802_v50, %v458_v59  ;;  %v2869_v50 = vmov 0  ;;  %v2872_v59 = vmov 0 }
  0xd0   : > { %vm465_vm10 = vcmp.eq.s32.totalorder %v1780_v43, %v1875_v0 }
  0xd1   : > { %vm1919_vm4 = vmor %vm1870_vm1, %vm465_vm10  ;;  %vm430_vm10 = vcmp.eq.s32.totalorder %v1866_v62, %v1825_v56 }
  0xd2   : > { %v2786_v6 = vsel %vm1919_vm4, 4294967295, %v2785_v6  ;;  %vm406_vm1 = vmor %vm366_vm5, %vm390_vm0  ;;  %vm2790_vm4 = vnez %v2782_v3  ;;  %vm469_vm5 = vcmp.eq.s32.totalorder %v1855_v60, %v1875_v0  ;;  %v2883_v3 = vmov 0 }
  0xd3   : > { %vm445_vm0 = vmor %vm405_vm6, %vm429_vm7  ;;  %vm328_vm7 = vcmp.eq.s32.totalorder %v1948_v10, %v1794_v48 }
  0xd4   : > { %vm1968_vm6 = vmor %vm445_vm0, %vm469_vm5  ;;  %vm391_vm5 = vcmp.eq.s32.totalorder %v1866_v62, %v1828_v57 }
  0xd5   : > { %1330 = vmatmul.mubr.msk.bf16.gmra.mrb[12].mxu0 %vm2767_vm3, %v688_v41  ;;  %vm1857_vm3 = vmor %vm400_vm12, %vm424_vm15  ;;  %vm324_vm12 = vcmp.eq.s32.totalorder %v1855_v60, %v1794_v48  ;;  %vm348_vm15 = vcmp.eq.s32.totalorder %v1855_v60, %v1797_v49  ;;  %v2799_v14 = vsel %vm1968_vm6, 4294967295, %v2798_v14  ;;  %vm504_vm6 = vcmp.eq.s32.totalorder %v1780_v43, %v1958_v12 }
  0xd6   : > { %v2778_v61 = vsel %vm1857_vm3, 4294967295, %v2777_v61  ;;  %vm364_vm8 = vmor %vm324_vm12, %vm348_vm15  ;;  %vm466_vm12 = vcmp.eq.s32.totalorder %v1820_v55, %v1882_v1  ;;  %vm467_vm15 = vcmp.eq.s32.totalorder %v1820_v55, %v1875_v0  ;;  %v2858_v41 = vmov 0 }
  0xd7   : > { %vm404_vm3 = vmor %vm364_vm8, %vm388_vm9  ;;  %vm2787_vm8 = vnez %v2778_v61  ;;  %v2875_v61 = vmov 0 }
  0xd8   : > { %vm1927_vm9 = vmor %vm2787_vm8, %vm464_vm14 }
  0xd9   : > { %v2789_v7 = vsel %vm1927_vm9, 4294967295, %v2788_v7  ;;  %vm1935_vm11 = vmor %vm2790_vm4, %vm466_vm12  ;;  %vm468_vm9 = vcmp.eq.s32.totalorder %v1855_v60, %v1882_v1  ;;  %vm351_vm4 = vcmp.eq.s32.totalorder %v1866_v62, %v1817_v54 }
  0xda   : > { %v2792_v8 = vsel %vm1935_vm11, 4294967295, %v2791_v8  ;;  %vm1941_vm8 = vmor %vm2793_vm13, %vm467_vm15  ;;  %vm470_vm15 = vcmp.eq.s32.totalorder %v1866_v62, %v1882_v1  ;;  %vm353_vm13 = vcmp.eq.s32.totalorder %v1948_v10, %v1817_v54 }
  0xdb   : > { %v2795_v9 = vsel %vm1941_vm8, 4294967295, %v2794_v9  ;;  %vm444_vm14 = vmor %vm404_vm3, %vm428_vm2  ;;  %vm327_vm2 = vcmp.eq.s32.totalorder %v1866_v62, %v1814_v53  ;;  %vm506_vm8 = vcmp.eq.s32.totalorder %v1820_v55, %v1958_v12 }
  0xdc   : > { %vm446_vm12 = vmor %vm406_vm1, %vm430_vm10  ;;  %vm352_vm1 = vcmp.eq.s32.totalorder %v1948_v10, %v1797_v49  ;;  %vm329_vm10 = vcmp.eq.s32.totalorder %v1948_v10, %v1814_v53 }
  0xdd   : > { %vm1960_vm3 = vmor %vm444_vm14, %vm468_vm9  ;;  %vm505_vm14 = vcmp.eq.s32.totalorder %v1780_v43, %v1953_v11 }
  0xde   : > { %v2797_v13 = vsel %vm1960_vm3, 4294967295, %v2796_v13  ;;  %vm1976_vm9 = vmor %vm446_vm12, %vm470_vm15  ;;  %vm508_vm12 = vcmp.eq.s32.totalorder %v1855_v60, %v1958_v12  ;;  %vm393_vm3 = vcmp.eq.s32.totalorder %v1948_v10, %v1828_v57 }
  0xdf   : > { %v2801_v15 = vsel %vm1976_vm9, 4294967295, %v2800_v15  ;;  %vm367_vm0 = vmor %vm327_vm2, %vm351_vm4  ;;  %vm392_vm9 = vcmp.eq.s32.totalorder %v1948_v10, %v1805_v51  ;;  %vm507_vm2 = vcmp.eq.s32.totalorder %v1820_v55, %v1953_v11  ;;  %vm509_vm4 = vcmp.eq.s32.totalorder %v1855_v60, %v1953_v11 }
  0xe0   : > { %vm368_vm15 = vmor %vm328_vm7, %vm352_vm1  ;;  %vm2802_vm1 = vnez %v2786_v6  ;;  %v2896_v6 = vmov 0 }
  0xe1   : > { %vm369_vm11 = vmor %vm329_vm10, %vm353_vm13  ;;  %vm510_vm10 = vcmp.eq.s32.totalorder %v1866_v62, %v1958_v12 }
  0xe2   : > { %vm2005_vm7 = vmor %vm2802_vm1, %vm505_vm14  ;;  %vm431_vm1 = vcmp.eq.s32.totalorder %v1866_v62, %v1839_v58  ;;  %vm2805_vm14 = vnez %v2789_v7  ;;  %v2347_v7 = vadd.s32 56, %v1780_v43 }
  0xe3   : > { %v2804_v17 = vsel %vm2005_vm7, 4294967295, %v2803_v17  ;;  %vm407_vm13 = vmor %vm367_vm0, %vm391_vm5  ;;  %vm2808_vm0 = vnez %v2797_v13  ;;  %v2904_v13 = vmov 0 }
  0xe4   : > { %vm2015_vm7 = vmor %vm2805_vm14, %vm504_vm6  ;;  %vm432_vm14 = vcmp.eq.s32.totalorder %v1948_v10, %v1825_v56 }
  0xe5   : > { %v2807_v18 = vsel %vm2015_vm7, 4294967295, %v2806_v18  ;;  %vm2021_vm5 = vmor %vm2808_vm0, %vm508_vm12  ;;  %vm2811_vm7 = vnez %v2792_v8  ;;  %vm2814_vm12 = vnez %v2795_v9  ;;  %v2899_v8 = vmov 0 }
  0xe6   : > { %v2810_v19 = vsel %vm2021_vm5, 4294967295, %v2809_v19  ;;  %vm408_vm6 = vmor %vm368_vm15, %vm392_vm9  ;;  %vm2817_vm9 = vnez %v2799_v14  ;;  %v2902_v9 = vmov 0 }
  0xe7   : > { %vm2029_vm0 = vmor %vm2811_vm7, %vm506_vm8  ;;  %vm433_vm8 = vcmp.eq.s32.totalorder %v1948_v10, %v1839_v58 }
  0xe8   : > { %v2813_v20 = vsel %vm2029_vm0, 4294967295, %v2812_v20  ;;  %vm2035_vm5 = vmor %vm2814_vm12, %vm507_vm2  ;;  %vm2820_vm0 = vnez %v2801_v15  ;;  %v2906_v15 = vmov 0 }
  0xe9   : > { %vm2041_vm15 = vmor %vm2817_vm9, %vm509_vm4  ;;  %vm471_vm4 = vcmp.eq.s32.totalorder %v1866_v62, %v1875_v0 }
  0xea   : > { %v2819_v22 = vsel %vm2041_vm15, 4294967295, %v2818_v22  ;;  %vm409_vm7 = vmor %vm369_vm11, %vm393_vm3  ;;  %vm472_vm3 = vcmp.eq.s32.totalorder %v1948_v10, %v1882_v1  ;;  %vm473_vm15 = vcmp.eq.s32.totalorder %v1948_v10, %v1875_v0 }
  0xeb   : > { %vm2052_vm2 = vmor %vm2820_vm0, %vm510_vm10 }
  0xec   : > { %vm447_vm12 = vmor %vm407_vm13, %vm431_vm1  ;;  %vm511_vm13 = vcmp.eq.s32.totalorder %v1866_v62, %v1953_v11 }
  0xed   : > { %vm448_vm11 = vmor %vm408_vm6, %vm432_vm14  ;;  %vm512_vm6 = vcmp.eq.s32.totalorder %v1948_v10, %v1958_v12  ;;  %vm545_vm14 = vcmp.eq.s32.totalorder %v1780_v43, %v2059_v25 }
  0xee   : > { %vm449_vm9 = vmor %vm409_vm7, %vm433_vm8  ;;  %vm2769_vm7 = vcmask 523264  }
  0xef   : > { %vm487_vm10 = vmor %vm447_vm12, %vm471_vm4  ;;  %vm513_vm12 = vcmp.eq.s32.totalorder %v1948_v10, %v1953_v11  ;;  %1380 = vmatprep.mubr.msk.f32.mxu0 %vm2769_vm7, %v1605_v31  ;;  %vm2831_vm4 = vnez %v2804_v17  ;;  %vm2837_vm7 = vnez %v2807_v18  ;;  %v2908_v17 = vmov 0 }
  0xf0   : > { %vm2072_vm0 = vmor %vm448_vm11, %vm472_vm3  ;;  %vm548_vm11 = vcmp.eq.s32.totalorder %v1855_v60, %v2048_v23 }
  0xf1   : > { %vm2083_vm8 = vmor %vm449_vm9, %vm473_vm15  ;;  %vm551_vm15 = vcmp.eq.s32.totalorder %v1866_v62, %v2059_v25 }
  0xf2   : > { %vm2093_vm3 = vmor %vm487_vm10, %vm511_vm13  ;;  %vm332_vm13 = vcmp.eq.s32.totalorder %v2079_v28, %v1794_v48 }
  0xf3   : > { %v2828_v30 = vsel %vm2093_vm3, 4294967295, %v2827_v30  ;;  %vm2112_vm10 = vmor %vm2072_vm0, %vm512_vm6  ;;  %vm550_vm0 = vcmp.eq.s32.totalorder %v1866_v62, %v2048_v23 }
  0xf4   : > { %v2830_v32 = vsel %vm2112_vm10, 4294967295, %v2829_v32  ;;  %vm2126_vm9 = vmor %vm2831_vm4, %vm545_vm14  ;;  %vm356_vm14 = vcmp.eq.s32.totalorder %v2079_v28, %v1797_v49  ;;  %vm2836_vm4 = vcmp.eq.s32.totalorder %v1780_v43, %v2048_v23 }
  0xf5   : > { %v2833_v34 = vsel %vm2126_vm9, 4294967295, %v2832_v34  ;;  %vm2137_vm6 = vmor %vm2083_vm8, %vm513_vm12  ;;  %vm2840_vm8 = vnez %v2810_v19  ;;  %vm2843_vm9 = vcmp.eq.s32.totalorder %v2066_v26, %v1797_v49  ;;  %v1606_v19 = vmov -3e+38  }
  0xf6   : > { %v2835_v35 = vsel %vm2137_vm6, 4294967295, %v2834_v35  ;;  %vm2150_vm1 = vmor %vm2837_vm7, %vm2836_vm4  ;;  %vm2844_vm7 = vcmp.eq.s32.totalorder %v2066_v26, %v1794_v48  ;;  %vm2845_vm6 = vcmp.eq.s32.totalorder %v1820_v55, %v2048_v23 }
  0xf7   : > { %v2839_v36 = vsel %vm2150_vm1, 4294967295, %v2838_v36  ;;  %vm2159_vm12 = vmor %vm2840_vm8, %vm548_vm11  ;;  %vm394_vm1 = vcmp.eq.s32.totalorder %v2066_v26, %v1805_v51  ;;  %vm2846_vm11 = vnez %v2813_v20 }
  0xf8   : > { %v2842_v37 = vsel %vm2159_vm12, 4294967295, %v2841_v37  ;;  %vm370_vm4 = vmor %vm2844_vm7, %vm2843_vm9  ;;  %vm2849_vm12 = vcmp.eq.s32.totalorder %v1820_v55, %v2059_v25  ;;  %vm2852_vm9 = vcmp.eq.s32.totalorder %v1855_v60, %v2059_v25  ;;  %vm2853_vm7 = vnez %v2819_v22 }
  0xf9   : > { %vm2178_vm8 = vmor %vm2846_vm11, %vm2845_vm6  ;;  %vm2856_vm6 = vcmp.eq.s32.totalorder %v2066_v26, %v1817_v54  ;;  %vm2857_vm11 = vcmp.eq.s32.totalorder %v2066_v26, %v1814_v53 }
  0xfa   : > { %v2848_v38 = vsel %vm2178_vm8, 4294967295, %v2847_v38  ;;  %vm2187_vm10 = vmor %vm2035_vm5, %vm2849_vm12  ;;  %vm395_vm5 = vcmp.eq.s32.totalorder %v2066_v26, %v1828_v57 }
  0xfb   : > { %v2851_v39 = vsel %vm2187_vm10, 4294967295, %v2850_v39  ;;  %vm2196_vm3 = vmor %vm2853_vm7, %vm2852_vm9  ;;  %vm396_vm7 = vcmp.eq.s32.totalorder %v2079_v28, %v1805_v51 }
  0xfc   : > { %v2855_v40 = vsel %vm2196_vm3, 4294967295, %v2854_v40  ;;  %vm371_vm8 = vmor %vm2857_vm11, %vm2856_vm6  ;;  %vm2860_vm3 = vnez %v2828_v30 }
  0xfd   : > { %vm2210_vm12 = vmor %vm2052_vm2, %vm550_vm0  ;;  %vm434_vm2 = vcmp.eq.s32.totalorder %v2066_v26, %v1825_v56  ;;  %vm435_vm0 = vcmp.eq.s32.totalorder %v2066_v26, %v1839_v58 }
  0xfe   : > { %v2859_v41 = vsel %vm2210_vm12, 4294967295, %v2858_v41  ;;  %vm372_vm9 = vmor %vm332_vm13, %vm356_vm14  ;;  %vm2863_vm14 = vcmask 523264  }
  0xff   : > { %vm2221_vm10 = vmor %vm2860_vm3, %vm551_vm15  ;;  %vm552_vm3 = vcmp.eq.s32.totalorder %v1948_v10, %v2048_v23  ;;  %1363 = vmatprep.mubr.msk.f32.mxu1 %vm2863_vm14, %v956_v47 }
 0x100   : > { %v2862_v45 = vsel %vm2221_vm10, 4294967295, %v2861_v45  ;;  %vm410_vm6 = vmor %vm370_vm4, %vm394_vm1  ;;  %vm436_vm1 = vcmp.eq.s32.totalorder %v2079_v28, %v1825_v56  ;;  %vm553_vm4 = vcmp.eq.s32.totalorder %v1948_v10, %v2059_v25  ;;  %vm474_vm10 = vcmp.eq.s32.totalorder %v2066_v26, %v1882_v1 }
 0x101   : > { %vm411_vm13 = vmor %vm371_vm8, %vm395_vm5  ;;  %vm585_vm8 = vcmp.eq.s32.totalorder %v1780_v43, %v2217_v42 }
 0x102   : > { %vm412_vm15 = vmor %vm372_vm9, %vm396_vm7  ;;  %vm475_vm9 = vcmp.eq.s32.totalorder %v2066_v26, %v1875_v0  ;;  %vm590_vm7 = vcmp.eq.s32.totalorder %v1866_v62, %v2230_v52 }
 0x103   : > { %vm450_vm11 = vmor %vm410_vm6, %vm434_vm2  ;;  %vm2866_vm6 = vnez %v2830_v32 }
 0x104   : > { %vm2245_vm5 = vmor %vm411_vm13, %vm435_vm0  ;;  %vm476_vm13 = vcmp.eq.s32.totalorder %v2079_v28, %v1882_v1 }
 0x105   : > { %vm2257_vm2 = vmor %vm2866_vm6, %vm552_vm3  ;;  %vm2871_vm3 = vnez %v2835_v35 }
 0x106   : > { %v2868_v46 = vsel %vm2257_vm2, 4294967295, %v2867_v46  ;;  %vm2261_vm12 = vmor %vm412_vm15, %vm436_vm1  ;;  %vm514_vm1 = vcmp.eq.s32.totalorder %v2066_v26, %v1958_v12  ;;  %vm2874_vm2 = vnez %v2833_v34 }
 0x107   : > { %v2870_v50 = vsel %vm2261_vm12, 4294967295, %v2869_v50  ;;  %vm2275_vm6 = vmor %vm2871_vm3, %vm553_vm4  ;;  %vm515_vm4 = vcmp.eq.s32.totalorder %v2066_v26, %v1953_v11 }
 0x108   : > { %v2873_v59 = vsel %vm2275_vm6, 4294967295, %v2872_v59  ;;  %vm490_vm15 = vmor %vm450_vm11, %vm474_vm10  ;;  %vm2877_vm10 = vcmp.eq.s32.totalorder %v1780_v43, %v2230_v52  ;;  %vm2878_vm11 = vnez %v2839_v36 }
 0x109   : > { %vm2283_vm12 = vmor %vm2874_vm2, %vm585_vm8  ;;  %vm2881_vm8 = vcmp.eq.s32.totalorder %v1855_v60, %v2230_v52  ;;  %vm2882_vm2 = vnez %v2842_v37 }
 0x10a   : > { %v2876_v61 = vsel %vm2283_vm12, 4294967295, %v2875_v61  ;;  %vm491_vm14 = vmor %vm2245_vm5, %vm475_vm9  ;;  %vm591_vm5 = vcmp.eq.s32.totalorder %v1866_v62, %v2217_v42  ;;  %vm2885_vm9 = vnez %v2870_v50 }
 0x10b   : > { %vm2298_vm3 = vmor %vm2878_vm11, %vm2877_vm10  ;;  %vm516_vm10 = vcmp.eq.s32.totalorder %v2079_v28, %v1958_v12  ;;  %vm2886_vm11 = vcmp.eq.s32.totalorder %v1820_v55, %v2230_v52 }
 0x10c   : > { %v2880_v63 = vsel %vm2298_vm3, 4294967295, %v2879_v63  ;;  %vm2307_vm0 = vmor %vm2882_vm2, %vm2881_vm8  ;;  %vm2887_vm3 = vnez %v2848_v38  ;;  %vm2890_vm8 = vcmp.eq.s32.totalorder %v1820_v55, %v2217_v42  ;;  %vm2891_vm2 = vnez %v2851_v39 }
 0x10d   : > { %v2884_v3 = vsel %vm2307_vm0, 4294967295, %v2883_v3  ;;  %vm492_vm12 = vmor %vm2885_vm9, %vm476_vm13  ;;  %vm2894_vm13 = vcmp.eq.s32.totalorder %v1855_v60, %v2217_v42  ;;  %vm2895_vm9 = vnez %v2855_v40 }
 0x10e   : > { %vm2322_vm6 = vmor %vm2887_vm3, %vm2886_vm11 }
 0x10f   : > { %v2889_v4 = vsel %vm2322_vm6, 4294967295, %v2888_v4  ;;  %vm2331_vm0 = vmor %vm2891_vm2, %vm2890_vm8  ;;  %vm554_vm6 = vcmp.eq.s32.totalorder %v2066_v26, %v2048_v23  ;;  %vm2898_vm8 = vnez %v2859_v41 }
 0x110   : > { %v2893_v5 = vsel %vm2331_vm0, 4294967295, %v2892_v5  ;;  %vm2340_vm3 = vmor %vm2895_vm9, %vm2894_vm13  ;;  %vm555_vm13 = vcmp.eq.s32.totalorder %v2066_v26, %v2059_v25  ;;  %vm2901_vm9 = vnez %v2862_v45 }
 0x111   : > { %v2897_v6 = vsel %vm2340_vm3, 4294967295, %v2896_v6  ;;  %vm530_vm11 = vmor %vm490_vm15, %vm514_vm1  ;;  %vm556_vm1 = vcmp.eq.s32.totalorder %v2079_v28, %v2048_v23 }
 0x112   : > { %vm2351_vm2 = vmor %vm2898_vm8, %vm590_vm7 }
 0x113   : > { %v2900_v8 = vsel %vm2351_vm2, 4294967295, %v2899_v8  ;;  %vm531_vm0 = vmor %vm491_vm14, %vm515_vm4  ;;  %vm333_vm14 = vcmp.eq.s32.totalorder %v2079_v28, %v1814_v53  ;;  %vm357_vm4 = vcmp.eq.s32.totalorder %v2079_v28, %v1817_v54  ;;  %vm397_vm2 = vcmp.eq.s32.totalorder %v2079_v28, %v1828_v57 }
 0x114   : > { %vm2359_vm3 = vmor %vm2901_vm9, %vm591_vm5  ;;  %vm592_vm5 = vcmp.eq.s32.totalorder %v1948_v10, %v2230_v52  ;;  %vm594_vm9 = vcmp.eq.s32.totalorder %v2066_v26, %v2230_v52 }
 0x115   : > { %v2903_v9 = vsel %vm2359_vm3, 4294967295, %v2902_v9  ;;  %vm532_vm15 = vmor %vm492_vm12, %vm516_vm10  ;;  %vm334_vm12 = vcmp.eq.s32.totalorder %v2347_v7, %v1794_v48  ;;  %vm593_vm10 = vcmp.eq.s32.totalorder %v1948_v10, %v2217_v42 }
 0x116   : > { %vm2365_vm7 = vmor %vm530_vm11, %vm554_vm6  ;;  %vm358_vm6 = vcmp.eq.s32.totalorder %v2347_v7, %v1797_v49  ;;  %v2911_v49 = vmov 0 }
 0x117   : > { %v2905_v13 = vsel %vm2365_vm7, 4294967295, %v2904_v13  ;;  %vm2375_vm8 = vmor %vm531_vm0, %vm555_vm13  ;;  %vm335_vm0 = vcmp.eq.s32.totalorder %v2347_v7, %v1814_v53  ;;  %vm359_vm13 = vcmp.eq.s32.totalorder %v2347_v7, %v1817_v54  ;;  %vm398_vm7 = vcmp.eq.s32.totalorder %v2347_v7, %v1805_v51 }
 0x118   : > { %v2907_v15 = vsel %vm2375_vm8, 4294967295, %v2906_v15  ;;  %vm2385_vm11 = vmor %vm532_vm15, %vm556_vm1  ;;  %vm2910_vm15 = vnez %v2868_v46 }
 0x119   : > { %v2909_v17 = vsel %vm2385_vm11, 4294967295, %v2908_v17  ;;  %vm373_vm3 = vmor %vm333_vm14, %vm357_vm4  ;;  %vm595_vm11 = vcmp.eq.s32.totalorder %v2066_v26, %v2217_v42  ;;  %vm2913_vm4 = vnez %v2873_v59 }
 0x11a   : > { %vm2399_vm1 = vmor %vm2910_vm15, %vm592_vm5  ;;  %vm399_vm15 = vcmp.eq.s32.totalorder %v2347_v7, %v1828_v57 }
 0x11b   : > { %v2912_v49 = vsel %vm2399_vm1, 4294967295, %v2911_v49  ;;  %vm374_vm8 = vmor %vm334_vm12, %vm358_vm6  ;;  %vm2918_vm12 = vnez %v2876_v61  ;;  %vm2919_vm6 = vnez %v2905_v13 }
 0x11c   : > { %vm2409_vm14 = vmor %vm2913_vm4, %vm593_vm10  ;;  %v617_v20 = vsel %vm2918_vm12, 0.0, %v1606_v19  ;;  %vm2925_vm4 = vnez %v2884_v3 }
 0x11d   : > { %vm2413_vm5 = vmor %vm335_vm0, %vm359_vm13  ;;  %vm437_vm0 = vcmp.eq.s32.totalorder %v2079_v28, %v1839_v58  ;;  %vm2924_vm13 = vnez %v2880_v63  ;;  %v620_v22 = vsel %vm2925_vm4, 0.0, %v1606_v19  ;;  %vm2936_vm4 = vnez %v2900_v8 }
 0x11e   : > { %vm2424_vm1 = vmor %vm2919_vm6, %vm594_vm9  ;;  %v616_v57 = vsel %vm2924_vm13, 0.0, %v1606_v19  ;;  %vm2926_vm9 = vnez %v2907_v15  ;;  %vm2931_vm6 = vnez %v2889_v4  ;;  %vm2932_vm13 = vnez %v2893_v5 }
 0x11f   : > { %vm2428_vm10 = vmor %vm373_vm3, %vm397_vm2  ;;  %vm438_vm2 = vcmp.eq.s32.totalorder %v2347_v7, %v1825_v56  ;;  %v618_v29 = vsel %vm2931_vm6, 0.0, %v1606_v19  ;;  %v619_v30 = vsel %vm2932_vm13, 0.0, %v1606_v19  ;;  %v622_v36 = vsel %vm2936_vm4, 0.0, %v1606_v19 }
 0x120   : > { %vm2442_vm12 = vmor %vm2926_vm9, %vm595_vm11  ;;  %vm2933_vm11 = vnez %v2897_v6  ;;  %vm596_vm9 = vcmp.eq.s32.totalorder %v2079_v28, %v2230_v52  ;;  %vm2939_vm6 = vnez %v2903_v9  ;;  %vm2947_vm4 = vcmask 523264  }
 0x121   : > { %vm2446_vm3 = vmor %vm374_vm8, %vm398_vm7  ;;  %v621_v32 = vsel %vm2933_vm11, 0.0, %v1606_v19  ;;  %vm439_vm8 = vcmp.eq.s32.totalorder %v2347_v7, %v1839_v58  ;;  %v623_v41 = vsel %vm2939_vm6, 0.0, %v1606_v19  ;;  %v2945_v58 = vmov 0 }
 0x122   : > { %vm2463_vm7 = vmor %vm2413_vm5, %vm399_vm15  ;;  %vm477_vm15 = vcmp.eq.s32.totalorder %v2079_v28, %v1875_v0  ;;  %v625_v13 = vsel %vm2409_vm14, 0.0, %v1606_v19 }
 0x123   : > { %vm2481_vm5 = vmor %vm2428_vm10, %vm437_vm0  ;;  %vm478_vm0 = vcmp.eq.s32.totalorder %v2347_v7, %v1882_v1 }
 0x124   : > { %vm2499_vm10 = vmor %vm2446_vm3, %vm438_vm2  ;;  %vm479_vm3 = vcmp.eq.s32.totalorder %v2347_v7, %v1875_v0  ;;  %vm2944_vm2 = vnez %v2909_v17  ;;  %v627_v17 = vsel %vm2442_vm12, 0.0, %v1606_v19 }
 0x125   : > { %vm2514_vm13 = vmor %vm2463_vm7, %vm439_vm8  ;;  %vm517_vm8 = vcmp.eq.s32.totalorder %v2079_v28, %v1953_v11 }
 0x126   : > { %vm2531_vm11 = vmor %vm2944_vm2, %vm596_vm9  ;;  %vm519_vm2 = vcmp.eq.s32.totalorder %v2347_v7, %v1953_v11 }
 0x127   : > { %v2946_v58 = vsel %vm2531_vm11, 4294967295, %v2945_v58  ;;  %vm493_vm7 = vmor %vm2481_vm5, %vm477_vm15  ;;  %vm518_vm5 = vcmp.eq.s32.totalorder %v2347_v7, %v1958_v12  ;;  %vm557_vm11 = vcmp.eq.s32.totalorder %v2079_v28, %v2059_v25 }
 0x128   : > { %vm2948_vm6 = vmmov %vm2947_vm4 }
 0x129   : > { %vm494_vm9 = vmor %vm2499_vm10, %vm478_vm0  ;;  %vm2950_vm0 = vnez %v2912_v49 }
 0x12a   : > { %vm495_vm15 = vmor %vm2514_vm13, %vm479_vm3  ;;  %v624_v12 = vsel %vm2950_vm0, 0.0, %v1606_v19  ;;  %vm558_vm3 = vcmp.eq.s32.totalorder %v2347_v7, %v2048_v23  ;;  %vm2952_vm0 = vnez %v2946_v58 }
 0x12b   : > { %vm2949_vm10 = vmmov %vm2947_vm4  ;;  %v628_v21 = vsel %vm2952_vm0, 0.0, %v1606_v19 }
 0x12c   : > { %vm534_vm13 = vmor %vm494_vm9, %vm518_vm5 }
 0x12d   : > { %vm574_vm9 = vmor %vm534_vm13, %vm558_vm3 }
 0x12e   : > { %vm2951_vm12 = vmmov %vm2949_vm10 }
 0x12f   : > { %vm2953_vm13 = vmmov %vm2949_vm10 }
 0x130   : > { %vm2954_vm3 = vmmov %vm2949_vm10 }
 0x190   : > { %v747_v14 = vpop.f32.mrb[0].mxu0 }
 0x191   : > { %v749_v16 = vpop.f32.mrb[1].mxu0  ;;  %v2487_v38 = vadd.f32 %v747_v14, %v616_v57  ;;  %v626_v14 = vsel %vm2424_vm1, 0.0, %v1606_v19  ;;  %vm598_vm1 = vcmp.eq.s32.totalorder %v2347_v7, %v2230_v52 }
 0x192   : > { %v751_v18 = vpop.f32.mrb[2].mxu0  ;;  %v2469_v34 = vadd.f32 %v749_v16, %v617_v20 }
 0x193   : > { %v753_v48 = vpop.f32.mrb[3].mxu0  ;;  %v2520_v50 = vadd.f32 %v751_v18, %v618_v29 }
 0x194   : > { %v2505_v47 = vadd.f32 %v753_v48, %v619_v30  ;;  %v800_v3 = vsel %vm2947_vm4, %v2469_v34, -inf }
 0x196   : > { %v801_v1 = vsel %vm2947_vm4, %v2505_v47, -inf  ;;  %vm535_vm4 = vmor %vm495_vm15, %vm519_vm2  ;;  %vm599_vm15 = vcmp.eq.s32.totalorder %v2347_v7, %v2217_v42 }
 0x197   : > { %vm614_vm2 = vmor %vm574_vm9, %vm598_vm1 }
 0x198   : > { %v757_v35 = vpop.f32.mrb[4].mxu0  ;;  %v630_v24 = vsel %vm614_vm2, 0.0, %v1606_v19 }
 0x199   : > { %v2489_v39 = vadd.f32 %v757_v35, %v620_v22  ;;  %v759_v40 = vpop.f32.mrb[5].mxu0 }
 0x19a   : > { %v2507_v2 = vadd.f32 %v759_v40, %v621_v32  ;;  %v761_v46 = vpop.f32.mrb[6].mxu0 }
 0x19b   : > { %v786_v59 = vmax.f32 %v2487_v38, %v2489_v39  ;;  %v2524_v61 = vadd.f32 %v761_v46, %v622_v36  ;;  %v763_v63 = vpop.f32.mrb[7].mxu0 }
 0x19c   : > { %v802_v4 = vsel %vm2948_vm6, %v2507_v2, -inf  ;;  %v2546_v5 = vadd.f32 %v763_v63, %v623_v41  ;;  %vm533_vm6 = vmor %vm493_vm7, %vm517_vm8  ;;  %vm559_vm7 = vcmp.eq.s32.totalorder %v2347_v7, %v2059_v25  ;;  %vm597_vm8 = vcmp.eq.s32.totalorder %v2079_v28, %v2217_v42 }
 0x19d   : > { %v803_v6 = vmax.f32 %v800_v3, %v802_v4  ;;  %v787_v8 = vmax.f32 %v2520_v50, %v2524_v61  ;;  %vm573_vm14 = vmor %vm533_vm6, %vm557_vm11 }
 0x19e   : > { %v804_v9 = vsel %vm2949_vm10, %v2546_v5, -inf  ;;  %vm575_vm5 = vmor %vm535_vm4, %vm559_vm7 }
 0x19f   : > { %v805_v0 = vmax.f32 %v801_v1, %v804_v9  ;;  %vm613_vm11 = vmor %vm573_vm14, %vm597_vm8 }
 0x1a0   : > { %v767_v11 = vpop.f32.mrb[8].mxu0  ;;  %vm615_vm6 = vmor %vm575_vm5, %vm599_vm15  ;;  %v629_v42 = vsel %vm613_vm11, 0.0, %v1606_v19 }
 0x1a1   : > { %v2583_v15 = vadd.f32 %v767_v11, %v624_v12  ;;  %v769_v16 = vpop.f32.mrb[9].mxu0  ;;  %v631_v30 = vsel %vm615_vm6, 0.0, %v1606_v19 }
 0x1a2   : > { %v2590_v23 = vadd.f32 %v769_v16, %v625_v13  ;;  %v771_v18 = vpop.f32.mrb[10].mxu0 }
 0x1a3   : > { %v788_v25 = vmax.f32 %v786_v59, %v2583_v15  ;;  %v772_v48 = vadd.f32 %v771_v18, %v626_v14  ;;  %v773_v49 = vpop.f32.mrb[11].mxu0 }
 0x1a4   : > { %v806_v53 = vsel %vm2951_vm12, %v2590_v23, -inf  ;;  %v2599_v54 = vadd.f32 %v773_v49, %v627_v17 }
 0x1a5   : > { %v807_v20 = vmax.f32 %v803_v6, %v806_v53  ;;  %v789_v51 = vmax.f32 %v787_v8, %v772_v48 }
 0x1a6   : > { %v808_v52 = vsel %vm2949_vm10, %v2599_v54, -inf }
 0x1a7   : > { %v809_v57 = vmax.f32 %v805_v0, %v808_v52 }
 0x1a8   : > { %v777_v22 = vpop.f32.mrb[12].mxu0 }
 0x1a9   : > { %v778_v27 = vadd.f32 %v777_v22, %v628_v21  ;;  %v779_v29 = vpop.f32.mrb[13].mxu0 }
 0x1aa   : > { %v2609_v32 = vadd.f32 %v779_v29, %v629_v42  ;;  %v781_v33 = vpop.f32.mrb[14].mxu0 }
 0x1ab   : > { %v790_v35 = vmax.f32 %v788_v25, %v778_v27  ;;  %v782_v36 = vadd.f32 %v781_v33, %v630_v24  ;;  %v783_v37 = vpop.f32.mrb[15].mxu0 }
 0x1ac   : > { %v810_v40 = vsel %vm2953_vm13, %v2609_v32, -inf  ;;  %v2613_v41 = vadd.f32 %v783_v37, %v631_v30 }
 0x1ad   : > { %v811_v45 = vmax.f32 %v807_v20, %v810_v40  ;;  %v791_v46 = vmax.f32 %v789_v51, %v782_v36 }
 0x1ae   : > { %v812_v56 = vsel %vm2954_vm3, %v2613_v41, -inf }
 0x1af   : > { %v792_v59 = vmax.f32 %v790_v35, %v791_v46  ;;  %v813_v63 = vmax.f32 %v809_v57, %v812_v56 }
 0x1b1   : > { %v793_v58 = vrot.slane %v792_v59, 4  ;;  %v814_v19 = vmax.f32 %v811_v45, %v813_v63 }
 0x1b3   : > { %v794_v3 = vmax.f32 %v792_v59, %v793_v58  ;;  %v815_v4 = vrot.slane %v814_v19, 4 }
 0x1b5   : > { %v795_v6 = vrot.slane %v794_v3, 2  ;;  %v816_v8 = vmax.f32 %v814_v19, %v815_v4 }
 0x1b7   : > { %v796_v1 = vmax.f32 %v794_v3, %v795_v6  ;;  %v817_v9 = vrot.slane %v816_v8, 2 }
 0x1b9   : > { %v797_v12 = vrot.slane %v796_v1, 1  ;;  %v818_v0 = vmax.f32 %v816_v8, %v817_v9 }
 0x1bb   : > { %v798_v13 = vmax.f32 %v796_v1, %v797_v12  ;;  %v819_v11 = vrot.slane %v818_v0, 1 }
 0x1bd   : > { %vm821_vm4 = vcmp.eq.f32.partialorder %v2487_v38, %v798_v13  ;;  %vm823_vm7 = vcmp.eq.f32.partialorder %v2520_v50, %v798_v13  ;;  %vm825_vm14 = vcmp.eq.f32.partialorder %v2489_v39, %v798_v13  ;;  %vm827_vm8 = vcmp.eq.f32.partialorder %v2524_v61, %v798_v13 }
 0x1be   : > { %vm829_vm9 = vcmp.eq.f32.partialorder %v2583_v15, %v798_v13  ;;  %vm831_vm1 = vcmp.eq.f32.partialorder %v772_v48, %v798_v13  ;;  %vm833_vm5 = vcmp.eq.f32.partialorder %v778_v27, %v798_v13  ;;  %vm835_vm15 = vcmp.eq.f32.partialorder %v782_v36, %v798_v13 }
 0x1bf   : > { %v837_v14 = vsel %vm821_vm4, %v1780_v43, 64  ;;  %v839_v16 = vsel %vm823_vm7, %v1820_v55, 64  ;;  %v841_v17 = vsel %vm825_vm14, %v1855_v60, 64  ;;  %v843_v18 = vsel %vm827_vm8, %v1866_v62, 64 }
 0x1c0   : > { %v845_v38 = vsel %vm829_vm9, %v1948_v10, 64  ;;  %v847_v50 = vsel %vm831_vm1, %v2066_v26, 64  ;;  %vm853_vm12 = vcmp.lt.s32.totalorder %v837_v14, %v841_v17  ;;  %vm855_vm11 = vcmp.lt.s32.totalorder %v839_v16, %v843_v18 }
 0x1c1   : > { %v820_v39 = vmax.f32 %v818_v0, %v819_v11  ;;  %v849_v61 = vsel %vm833_vm5, %v2079_v28, 64  ;;  %v851_v15 = vsel %vm835_vm15, %v2347_v7, 64  ;;  %v854_v25 = vsel %vm853_vm12, %v837_v14, %v841_v17 }
 0x1c2   : > { %v856_v48 = vsel %vm855_vm11, %v839_v16, %v843_v18  ;;  %vm857_vm2 = vcmp.lt.s32.totalorder %v854_v25, %v845_v38  ;;  %vm2955_vm15 = vcmask 523264   ;;  %v1607_v0 = vmov 0.0  }
 0x1c3   : > { %vm859_vm10 = vcmp.lt.s32.totalorder %v856_v48, %v847_v50  ;;  %vm822_vm0 = vcmp.eq.f32.partialorder %v2469_v34, %v820_v39  ;;  %vm824_vm6 = vcmp.eq.f32.partialorder %v2505_v47, %v820_v39  ;;  %v858_v49 = vsel %vm857_vm2, %v854_v25, %v845_v38  ;;  %vm2956_vm12 = vmmov %vm2955_vm15 }
 0x1c4   : > { %v860_v53 = vsel %vm859_vm10, %v856_v48, %v847_v50  ;;  %vm826_vm13 = vcmp.eq.f32.partialorder %v2507_v2, %v820_v39  ;;  %vm828_vm3 = vcmp.eq.f32.partialorder %v2546_v5, %v820_v39  ;;  %vm861_vm4 = vcmp.lt.s32.totalorder %v858_v49, %v849_v61  ;;  %vm2957_vm11 = vmmov %vm2956_vm12 }
 0x1c5   : > { %vm863_vm7 = vcmp.lt.s32.totalorder %v860_v53, %v851_v15  ;;  %vm830_vm14 = vcmp.eq.f32.partialorder %v2590_v23, %v820_v39  ;;  %vm832_vm8 = vcmp.eq.f32.partialorder %v2599_v54, %v820_v39  ;;  %v862_v20 = vsel %vm861_vm4, %v858_v49, %v849_v61  ;;  %vm2958_vm2 = vmmov %vm2957_vm11 }
 0x1c6   : > { %v864_v51 = vsel %vm863_vm7, %v860_v53, %v851_v15  ;;  %vm834_vm9 = vcmp.eq.f32.partialorder %v2609_v32, %v820_v39  ;;  %vm836_vm1 = vcmp.eq.f32.partialorder %v2613_v41, %v820_v39  ;;  %v838_v34 = vsel %vm822_vm0, %v1780_v43, 64 }
 0x1c7   : > { %vm865_vm5 = vcmp.lt.s32.totalorder %v862_v20, %v864_v51  ;;  %v840_v47 = vsel %vm824_vm6, %v1820_v55, 64  ;;  %v842_v2 = vsel %vm826_vm13, %v1855_v60, 64  ;;  %v844_v52 = vsel %vm828_vm3, %v1866_v62, 64  ;;  %vm2959_vm13 = vmmov %vm2958_vm2 }
 0x1c8   : > { %v866_v5 = vsel %vm865_vm5, %v862_v20, %v864_v51  ;;  %v846_v23 = vsel %vm830_vm14, %v1948_v10, 64  ;;  %v848_v54 = vsel %vm832_vm8, %v2066_v26, 64  ;;  %v850_v57 = vsel %vm834_vm9, %v2079_v28, 64  ;;  %vm2960_vm3 = vmmov %vm2958_vm2 }
 0x1c9   : > { %v867_v21 = vrot.slane %v866_v5, 4  ;;  %v852_v42 = vsel %vm836_vm1, %v2347_v7, 64  ;;  %v876_v22 = vsel %vm2955_vm15, %v838_v34, 2147483647  ;;  %v877_v24 = vsel %vm2956_vm12, %v840_v47, 2147483647  ;;  %vm2961_vm14 = vmmov %vm2958_vm2 }
 0x1ca   : > { %v878_v27 = vsel %vm2957_vm11, %v842_v2, 2147483647  ;;  %v881_v29 = vsel %vm2958_vm2, %v844_v52, 2147483647  ;;  %v884_v30 = vsel %vm2959_vm13, %v846_v23, 2147483647  ;;  %vm2962_vm8 = vmmov %vm2958_vm2 }
 0x1cb   : > { %vm868_vm10 = vcmp.lt.s32.totalorder %v866_v5, %v867_v21  ;;  %vm879_vm0 = vcmp.lt.s32.totalorder %v876_v22, %v878_v27  ;;  %vm882_vm6 = vcmp.lt.s32.totalorder %v877_v24, %v881_v29  ;;  %v887_v36 = vsel %vm2960_vm3, %v848_v54, 2147483647  ;;  %v290_v47 = vld [vmem:[%s2762_s3] sm:$0xff] }
 0x1cc   : > { %v869_v32 = vsel %vm868_vm10, %v866_v5, %v867_v21  ;;  %v880_v33 = vsel %vm879_vm0, %v876_v22, %v878_v27  ;;  %v883_v35 = vsel %vm882_vm6, %v877_v24, %v881_v29  ;;  %v890_v45 = vsel %vm2961_vm14, %v850_v57, 2147483647  ;;  %vm2963_vm14 = vmmov %vm2962_vm8 }
 0x1cd   : > { %v870_v37 = vrot.slane %v869_v32, 2  ;;  %vm885_vm4 = vcmp.lt.s32.totalorder %v880_v33, %v884_v30  ;;  %vm888_vm7 = vcmp.lt.s32.totalorder %v883_v35, %v887_v36  ;;  %v893_v46 = vsel %vm2962_vm8, %v852_v42, 2147483647  ;;  %vm2662_vm8 = vmpackc.low %vm2963_vm14, %vm2963_vm14 }
 0x1ce   : > { %v886_v40 = vsel %vm885_vm4, %v880_v33, %v884_v30  ;;  %v889_v41 = vsel %vm888_vm7, %v883_v35, %v887_v36  ;;  %v1608_v38 = vmov 1.0|1.0   ;;  %vm1609_vm14 = vmmov 0  }
 0x1cf   : > { %vm871_vm9 = vcmp.lt.s32.totalorder %v869_v32, %v870_v37  ;;  %vm891_vm1 = vcmp.lt.s32.totalorder %v886_v40, %v890_v45  ;;  %vm894_vm5 = vcmp.lt.s32.totalorder %v889_v41, %v893_v46 }
 0x1d0   : > { %v892_v56 = vsel %vm891_vm1, %v886_v40, %v890_v45  ;;  %v895_v59 = vsel %vm894_vm5, %v889_v41, %v893_v46  ;;  %v872_v63 = vsel %vm871_vm9, %v869_v32, %v870_v37 }
 0x1d1   : > { %vm896_vm15 = vcmp.lt.s32.totalorder %v892_v56, %v895_v59  ;;  %v873_v3 = vrot.slane %v872_v63, 1 }
 0x1d2   : > { %v897_v58 = vsel %vm896_vm15, %v892_v56, %v895_v59 }
 0x1d3   : > { %v898_v19 = vrot.slane %v897_v58, 4  ;;  %vm874_vm11 = vcmp.lt.s32.totalorder %v872_v63, %v873_v3 }
 0x1d4   : > { %v875_v1 = vsel %vm874_vm11, %v872_v63, %v873_v3 }
 0x1d5   : > { %vm899_vm12 = vcmp.lt.s32.totalorder %v897_v58, %v898_v19  ;;  %vm907_vm0 = vcmp.eq.s32.totalorder %v1780_v43, %v875_v1  ;;  %vm909_vm6 = vcmp.eq.s32.totalorder %v1820_v55, %v875_v1  ;;  %vm911_vm15 = vcmp.eq.s32.totalorder %v1855_v60, %v875_v1 }
 0x1d6   : > { %v900_v4 = vsel %vm899_vm12, %v897_v58, %v898_v19  ;;  %vm1399_vm9 = vmpackc.low %vm909_vm6, %vm907_vm0  ;;  %vm913_vm12 = vcmp.eq.s32.totalorder %v1866_v62, %v875_v1  ;;  %vm915_vm0 = vcmp.eq.s32.totalorder %v1948_v10, %v875_v1  ;;  %vm917_vm6 = vcmp.eq.s32.totalorder %v2066_v26, %v875_v1 }
 0x1d7   : > { %v901_v6 = vrot.slane %v900_v4, 2  ;;  %vm1404_vm11 = vmpackc.low %vm913_vm12, %vm911_vm15 }
 0x1d9   : > { %vm902_vm2 = vcmp.lt.s32.totalorder %v900_v4, %v901_v6 }
 0x1da   : > { %v903_v8 = vsel %vm902_vm2, %v900_v4, %v901_v6 }
 0x1db   : > { %v904_v9 = vrot.slane %v903_v8, 1 }
 0x1dd   : > { %vm905_vm10 = vcmp.lt.s32.totalorder %v903_v8, %v904_v9 }
 0x1de   : > { %v906_v12 = vsel %vm905_vm10, %v903_v8, %v904_v9 }
 0x1df   : > { %vm908_vm13 = vcmp.eq.s32.totalorder %v1780_v43, %v906_v12  ;;  %vm910_vm3 = vcmp.eq.s32.totalorder %v1820_v55, %v906_v12  ;;  %vm912_vm4 = vcmp.eq.s32.totalorder %v1855_v60, %v906_v12  ;;  %vm914_vm7 = vcmp.eq.s32.totalorder %v1866_v62, %v906_v12 }
 0x1e0   : > { %v1332_v13 = vsel %vm908_vm13, 1.0, %v1607_v0  ;;  %v1334_v11 = vsel %vm910_vm3, 1.0, %v1607_v0  ;;  %v1336_v16 = vsel %vm912_vm4, 1.0, %v1607_v0  ;;  %v1338_v17 = vsel %vm914_vm7, 1.0, %v1607_v0  ;;  %vm1409_vm13 = vmpackc.low %vm917_vm6, %vm915_vm0 }
 0x1e1   : > { %v1396_v18 = vpack.c.bf16 %v1334_v11, %v1332_v13  ;;  %v1401_v55 = vpack.c.bf16 %v1338_v17, %v1336_v16  ;;  %vm916_vm1 = vcmp.eq.s32.totalorder %v1948_v10, %v906_v12  ;;  %vm918_vm5 = vcmp.eq.s32.totalorder %v2066_v26, %v906_v12  ;;  %v1503_v10 = vld [vmem:[%s1766_s12] sm:$0xff] }
 0x1e2   : > { %v1340_v43 = vsel %vm916_vm1, 1.0, %v1607_v0  ;;  %v1342_v50 = vsel %vm918_vm5, 1.0, %v1607_v0  ;;  %vm920_vm2 = vcmp.eq.s32.totalorder %v2079_v28, %v906_v12  ;;  %vm922_vm10 = vcmp.eq.s32.totalorder %v2347_v7, %v906_v12  ;;  %v291_v26 = vld [vmem:[%s2763_s4] sm:$0xff] }
 0x1e3   : > { %1398 = vmatprep.subr.msk.bf16.mxu1 %vm2662_vm8, %v1396_v18  ;;  %1418 = vmatprep.subr.msk.bf16.mxu0 %vm2662_vm8, %v1396_v18  ;;  %v1406_v39 = vpack.c.bf16 %v1342_v50, %v1340_v43  ;;  %v1344_v60 = vsel %vm920_vm2, 1.0, %v1607_v0  ;;  %v1346_v62 = vsel %vm922_vm10, 1.0, %v1607_v0  ;;  %vm919_vm3 = vcmp.eq.s32.totalorder %v2079_v28, %v875_v1  ;;  %v297_v28 = vld [vmem:[%s2764_s5] sm:$0xff] }
 0x1e4   : > { %1400 = vmatpush1.bf16.xpose.msk.msra.mxu1 %vm1399_vm9, %v1608_v38  ;;  %1420 = vmatpush1.bf16.xpose.msk.msra.mxu0 %vm1399_vm9, %v1608_v38  ;;  %v1411_v61 = vpack.c.bf16 %v1346_v62, %v1344_v60  ;;  %vm921_vm4 = vcmp.eq.s32.totalorder %v2347_v7, %v875_v1  ;;  %vm2967_vm9 = vcmask 31744   ;;  %vm2968_vm1 = vcmask 523264  }
 0x1e5   : > { %1403 = vmatprep.subr.msk.bf16.mxu1 %vm2662_vm8, %v1401_v55  ;;  %1423 = vmatprep.subr.msk.bf16.mxu0 %vm2662_vm8, %v1401_v55  ;;  %vm1414_vm7 = vmpackc.low %vm921_vm4, %vm919_vm3 }
 0x1e6   : > { %294 = vperm.xlu0 %1488, %v291_v26   ;;  %300 = vperm.xlu1 %1489, %v297_v28  }
 0x1ec   : > { %1405 = vmatpush1.bf16.xpose.msk.msra.mxu1 %vm1404_vm11, %v1608_v38  ;;  %1425 = vmatpush1.bf16.xpose.msk.msra.mxu0 %vm1404_vm11, %v1608_v38 }
 0x1ed   : > { %1408 = vmatprep.subr.msk.bf16.mxu1 %vm2662_vm8, %v1406_v39  ;;  %1428 = vmatprep.subr.msk.bf16.mxu0 %vm2662_vm8, %v1406_v39 }
 0x1f4   : > { %1410 = vmatpush1.bf16.xpose.msk.msra.mxu1 %vm1409_vm13, %v1608_v38  ;;  %1430 = vmatpush1.bf16.xpose.msk.msra.mxu0 %vm1409_vm13, %v1608_v38 }
 0x1f5   : > { %1413 = vmatprep.subr.msk.bf16.mxu1 %vm2662_vm8, %v1411_v61  ;;  %1433 = vmatprep.subr.msk.bf16.mxu0 %vm2662_vm8, %v1411_v61  ;;  %vm2966_vm8 = vcmask 1043456  }
 0x1fc   : > { %1415 = vmatpush1.bf16.xpose.msk.msra.mxu1 %vm1414_vm7, %v1608_v38  ;;  %1435 = vmatpush1.bf16.xpose.msk.msra.mxu0 %vm1414_vm7, %v1608_v38 }
 0x1fd   : > { %1391 = vmatprep.subr.mxu1 %v1607_v0 }
 0x203   : > { %1121 = vmatmul.mubr.f32.vlgmr.msra.gmra.mrb[16].mxu0 %v1605_v31  ;;  %1048 = vmatmul.mubr.f32.vlgmr.msra.gmra.mrb[0].mxu1 %v1503_v10  ;;  %v1504_v31 = vld [vmem:[%s1755_s7] sm:$0xf]  ;;  %s1323_s7 = sshll.u32 %s1751_s26, 3 }
 0x204   : > { %1393 = vmatprep.mubr.msk.f32.mxu1 %vm1609_vm14, %v1607_v0  ;;  %s281_s20 = scalar_lea.vmem [#allocation5], %s1323_s7 }
 0x205   : > { %s1234_s12 = sshll.u32 %s281_s20, 4  ;;  %s2716_s12 = int_to_ptr.vmem [resolvable:$true] %s1234_s12 }
 0x206   : > { %s1535_s15 = scalar_lea.vmem %s2716_s12, 128  ;;  %p1542_p10 = scmp.lt.s32.totalorder %s2716_s12, %s1540_s17 }
 0x207   : > { %p1536_p6 = scmp.ne.s32.totalorder %s2716_s12, %s1535_s15  ;;  %p1543_p2 = scmp.lt.s32.totalorder %s1541_s28, %s1535_s15 }
 0x209   : > { %p1537_p13 = pnand %p1536_p6, %p2969_p12  ;;  %p1544_p4 = por %p1543_p2, %p1542_p10 }
 0x20b   : > { %p1538_p7 = pneg %p1537_p13 }
 0x20d   : > { %p1545_p5 = pnand %p1544_p4, %p1538_p7 }
 0x265   : > { %v295_v2 = vpop.permute.xlu0 %294  ;;  %v301_v52 = vpop.permute.xlu1 %300 }
 0x2d6   : > { %v1122_v7 = vpop.f32.mrb[16].mxu0  ;;  %v1049_v15 = vpop.f32.mrb[0].mxu1 }
 0x2d7   : > { %v1123_v25 = vadd.f32 1.0, %v1122_v7  ;;  %v1124_v48 = vpop.f32.mrb[17].mxu0  ;;  %v1051_v49 = vpop.f32.mrb[1].mxu1  ;;  %v1128_v53 = vadd.f32 %v1504_v31, %v1049_v15 }
 0x2d9   : > { %1497 = vrcp.f32 %v1123_v25 }
 0x2e3   : > { %v1498_v20 = vpop.eup %1497 }
 0x2e4   : > { %v1132_v51 = vrot.slane %v1498_v20, %v1783_v44 }
 0x2e6   : > { %v1133_v34 = vmul.f32 %v1132_v51, %v1128_v53 }
 0x2e8   : > { %1392 = vmatpush3.msk.msra.mxu1 %vm2966_vm8, %v1133_v34 }
 0x2e9   : > { %1394 = vmatmul.mubr.msk.f32.vlgmr.msra.gmra.mrb[2].mxu1 %vm2967_vm9, %v290_v47 }
 0x3bc   : > { %v1206_v5 = vpop.f32.mrb[2].mxu1 }
 0x3bd   : > { %v1210_v23 = vmul.f32 %v1206_v5, %v295_v2  ;;  %v1395_v54 = vpop.f32.mrb[3].mxu1 }
 0x3bf   : > { %v1211_v21 = vadd.f32 %v1210_v23, %v301_v52 }
 0x3c1   : > { %v1383_v57 = vmul.f32 -1.442695, %v1211_v21 }
 0x3c3   : > { %1499 = vpow2.f32 %v1383_v57 }
 0x3cd   : > { %v1500_v44 = vpop.eup %1499 }
 0x3ce   : > { %v1215_v42 = vadd.f32 1.0, %v1500_v44 }
 0x3d0   : > { %1501 = vrcp.f32 %v1215_v42 }
 0x3da   : > { %v1502_v22 = vpop.eup %1501 }
 0x3db   : > { %v1218_v24 = vmul.f32 %v1502_v22, %v1211_v21 }
 0x3dd   : > { %1219 = vst.msk [vmem:[%s281_s20] sm:$0xff] %vm2968_vm1, %v1218_v24 }
 0x3de   : > { %1548 = shalt.err (!%p1545_p5)
}
 0x3df   : > { %s1549_s26 = scalar_lea.hbm %s2714_s11, 128  ;;  %s1553_s18 = scalar_lea.hbm %s2765_s6, 256 }
 0x3e0   : > { %p1550_p8 = scmp.ne.s32.totalorder %s2714_s11, %s1549_s26  ;;  %p1554_p1 = scmp.lt.u32.totalorder %s2714_s11, %s2765_s6 }
 0x3e1   : > { %p1555_p3 = scmp.lt.u32.totalorder %s1553_s18, %s1549_s26  ;;  %p1557_p6 = scmp.lt.u32.totalorder %s1549_s26, %s2714_s11 }
 0x3e2   : > { %p1551_p9 = pnand %p1550_p8, %p2969_p12 }
 0x3e3   : > { %p1556_p11 = por %p1555_p3, %p1554_p1 }
 0x3e4   : > { %p1552_p0 = pneg %p1551_p9 }
 0x3e5   : > { %p1558_p13 = por %p1557_p6, %p1556_p11 }
 0x3e7   : > { %p1559_p7 = pnand %p1558_p13, %p1552_p0 }
 0x3e9   : > { %1562 = shalt.err (!%p1559_p7)
}
 0x3ea   : > { %1438 = dma.vmem_to_hbm [thread:$0]  (%p2969_p12), %s2716_s12, 128, %s2714_s11, %s1221_s14  }
 0x3eb PF: > { %s1246_s20 = sand.u32 1, %s1589_s21   ;;  %p2970_p10 = scmp.ne.s32.totalorder %s2773_s10, 0 }
 0x3ec   : > { %p2971_p2 = scmp.ge.s32.totalorder %s1601_s24, 2  ;;  %s1247_s8 = scalar_lea.sflag [#allocation4], %s1246_s20 }
 0x3ee   : > { %p1445_p4 = pnand %p2971_p2, %p2970_p10 }
 0x3f0   : > { %1584 = dma.done.wait (!%p1445_p4), %s1247_s8, 128  }
 0x3f1   : > { %1586 = vsyncadd (!%p1445_p4), %s1247_s8, 4294967168  ;;  %p19_p5 = scmp.ge.s32.totalorder %s1671_s27, 4   ;;  %s2972_s21 = smov %s1593_s22 }
 0x3f2   : > { %s2973_s22 = smov %s1597_s23  ;;  %s2974_s23 = smov %s1683_s30 }
 0x3f3   : > { %s2975_s24 = smov %s1671_s27  ;;  %21 = sbr.rel (!%p19_p5) target bundleno = 5 (0x5), region = 92 }
 0x3fa   :  { %1252 = vsyncpa [#allocation3], 1 }
 0x3fb   :  { %1254 = vsyncpa [#allocation3 + $0x1], 1 }
 0x3fc   :  { %1255 = vsyncpa [#allocation4], 1 }
 0x3fd   :  { %1257 = vsyncpa [#allocation4 + $0x1], 1 }

</bundles_post_ra>
